<compile_context>
chip_gen: v7x
topology: tpu7x:2x2x1
jax: 0.10.0
libtpu: 0.0.40
codegen_flags: <defaults>
</compile_context>

<pallas_src>
import functools

import jax
import jax.numpy as jnp
from jax.experimental import pallas as pl
from jax.experimental.pallas import tpu as pltpu

EPS = 1e-5
TM = 512                        # output positions per tile (lane axis)
VMEM_LIMIT = 32 * 1024 * 1024   # explicit scoped-VMEM limit, safe on v5e/v6e/v7x


def _round_up(x, m):
    return (x + m - 1) // m * m


def _pad_to(a, axis, mult):
    size = a.shape[axis]
    tgt = _round_up(size, mult)
    if tgt == size:
        return a
    pads = [(0, 0)] * a.ndim
    pads[axis] = (0, tgt - size)
    return jnp.pad(a, pads)


# ---------------------------------------------------------------------------
# Kernel 1: conv1 as bf16 MXU matmul (f32 acc), bf16 store, packed BN partials.
# ---------------------------------------------------------------------------
def _conv_stats_kernel(w_ref, p_ref, y_ref, stat_ref):
    # (Cout, K) @ (K, TM) -> (Cout, TM): M on lanes, channels on sublanes.
    y = jnp.dot(w_ref[...], p_ref[...], preferred_element_type=jnp.float32)
    y_ref[...] = y.astype(y_ref.dtype)               # bf16 store (halved traffic)
    s = jnp.sum(y, axis=1, keepdims=True)            # (C, 1) f32 partial sum
    ss = jnp.sum(y * y, axis=1, keepdims=True)       # (C, 1) f32 partial sumsq
    stat_ref[0] = jnp.concatenate([s, ss], axis=0)   # packed (2C, 1)


def conv_stats(wT, pT, *, tm=TM):
    """wT: (C, Kp) bf16; pT: (Kp, Mp) bf16, Mp % tm == 0.
    Returns (y bf16 (C, Mp), packed stats f32 (nt, 2C, 1))."""
    c, kp = wT.shape
    mp = pT.shape[1]
    nt = mp // tm
    return pl.pallas_call(
        _conv_stats_kernel,
        grid=(nt,),
        in_specs=[pl.BlockSpec((c, kp), lambda i: (0, 0)),
                  pl.BlockSpec((kp, tm), lambda i: (0, i))],
        out_specs=(pl.BlockSpec((c, tm), lambda i: (0, i)),
                   pl.BlockSpec((1, 2 * c, 1), lambda i: (i, 0, 0))),
        out_shape=(jax.ShapeDtypeStruct((c, mp), jnp.bfloat16),
                   jax.ShapeDtypeStruct((nt, 2 * c, 1), jnp.float32)),
        compiler_params=pltpu.CompilerParams(
            dimension_semantics=("parallel",),
            vmem_limit_bytes=VMEM_LIMIT),
    )(wT, pT)


# ---------------------------------------------------------------------------
# Kernel 2: conv2 with fused BN1-apply + relu on the input tile, bf16 y2 store,
# packed BN2 partials, and downsample (1x1x1) BN partials (no rp store).
# ---------------------------------------------------------------------------
def _conv2_fused_kernel(w_ref, p_ref, sc1_ref, sh1_ref, wd_ref, r_ref,
                        y_ref, stat_ref, statd_ref, *, m_valid, mp, tm):
    # BN1 apply + relu on the im2col'd *pre-BN* conv1 output.  Row index is
    # tap*C1 + channel, and BN is per-channel, so sc1/sh1 are the per-channel
    # vectors tiled over the 27 taps (zero in the K padding -> contributes 0).
    a = p_ref[...].astype(jnp.float32) * sc1_ref[...] + sh1_ref[...]
    a = jnp.maximum(a, 0.0)
    if m_valid < mp:   # zero out padded M columns so BN2/BNd stats stay exact
        col = (jax.lax.broadcasted_iota(jnp.int32, (1, tm), 1)
               + pl.program_id(0) * tm)
        a = jnp.where(col < m_valid, a, 0.0)

    y = jnp.dot(w_ref[...], a.astype(jnp.bfloat16),
                preferred_element_type=jnp.float32)
    y_ref[...] = y.astype(y_ref.dtype)               # bf16 store
    stat_ref[0] = jnp.concatenate(
        [jnp.sum(y, axis=1, keepdims=True),
         jnp.sum(y * y, axis=1, keepdims=True)], axis=0)

    # Downsample 1x1x1 conv: stats only here; the output is recomputed in the
    # final apply kernel instead of being round-tripped through HBM.
    r = jnp.dot(wd_ref[...], r_ref[...], preferred_element_type=jnp.float32)
    statd_ref[0] = jnp.concatenate(
        [jnp.sum(r, axis=1, keepdims=True),
         jnp.sum(r * r, axis=1, keepdims=True)], axis=0)


def conv2_fused(w2T, p2, sc1k, sh1k, wdT, res, *, m_valid, tm=TM):
    c, kp = w2T.shape
    mp = p2.shape[1]
    cd = wdT.shape[1]
    nt = mp // tm
    kern = functools.partial(_conv2_fused_kernel, m_valid=m_valid, mp=mp, tm=tm)
    return pl.pallas_call(
        kern,
        grid=(nt,),
        in_specs=[pl.BlockSpec((c, kp), lambda i: (0, 0)),
                  pl.BlockSpec((kp, tm), lambda i: (0, i)),
                  pl.BlockSpec((kp, 1), lambda i: (0, 0)),
                  pl.BlockSpec((kp, 1), lambda i: (0, 0)),
                  pl.BlockSpec((c, cd), lambda i: (0, 0)),
                  pl.BlockSpec((cd, tm), lambda i: (0, i))],
        out_specs=(pl.BlockSpec((c, tm), lambda i: (0, i)),
                   pl.BlockSpec((1, 2 * c, 1), lambda i: (i, 0, 0)),
                   pl.BlockSpec((1, 2 * c, 1), lambda i: (i, 0, 0))),
        out_shape=(jax.ShapeDtypeStruct((c, mp), jnp.bfloat16),
                   jax.ShapeDtypeStruct((nt, 2 * c, 1), jnp.float32),
                   jax.ShapeDtypeStruct((nt, 2 * c, 1), jnp.float32)),
        compiler_params=pltpu.CompilerParams(
            dimension_semantics=("parallel",),
            vmem_limit_bytes=VMEM_LIMIT),
    )(w2T, p2, sc1k, sh1k, wdT, res)


# ---------------------------------------------------------------------------
# Tiny cross-tile reduction (plain JAX): packed partials -> per-channel BN
# scale/shift (training-mode, biased variance).
# ---------------------------------------------------------------------------
def _bn_scale_shift(stats, c, m_valid, gamma, beta):
    tot = jnp.sum(stats, axis=0)[:, 0]          # (2c,)
    mean = tot[:c] / m_valid
    var = tot[c:] / m_valid - mean * mean       # biased variance (training BN)
    scale = gamma * jax.lax.rsqrt(var + EPS)
    shift = beta - mean * scale
    return scale.reshape(-1, 1), shift.reshape(-1, 1)


# ---------------------------------------------------------------------------
# Kernel 3: final BN2 apply + recomputed downsample (1x1x1 + BNd) + add + relu
# ---------------------------------------------------------------------------
def _final_apply_kernel(y_ref, sc_ref, sh_ref, wd_ref, r_ref, scd_ref, shd_ref,
                        o_ref):
    out = y_ref[...].astype(jnp.float32) * sc_ref[...] + sh_ref[...]
    r = jnp.dot(wd_ref[...], r_ref[...], preferred_element_type=jnp.float32)
    out = out + (r * scd_ref[...] + shd_ref[...])
    o_ref[...] = jnp.maximum(out, 0.0).astype(o_ref.dtype)


def final_apply(y, scale, shift, wdT, res, scaled, shiftd, *, out_dtype, tm=TM):
    c, mp = y.shape
    cd = wdT.shape[1]
    nt = mp // tm
    return pl.pallas_call(
        _final_apply_kernel,
        grid=(nt,),
        in_specs=[pl.BlockSpec((c, tm), lambda i: (0, i)),
                  pl.BlockSpec((c, 1), lambda i: (0, 0)),
                  pl.BlockSpec((c, 1), lambda i: (0, 0)),
                  pl.BlockSpec((c, cd), lambda i: (0, 0)),
                  pl.BlockSpec((cd, tm), lambda i: (0, i)),
                  pl.BlockSpec((c, 1), lambda i: (0, 0)),
                  pl.BlockSpec((c, 1), lambda i: (0, 0))],
        out_specs=pl.BlockSpec((c, tm), lambda i: (0, i)),
        out_shape=jax.ShapeDtypeStruct((c, mp), out_dtype),
        compiler_params=pltpu.CompilerParams(
            dimension_semantics=("parallel",),
            vmem_limit_bytes=VMEM_LIMIT),
    )(y, scale.astype(jnp.float32), shift.astype(jnp.float32),
      wdT, res, scaled.astype(jnp.float32), shiftd.astype(jnp.float32))


# ---------------------------------------------------------------------------
# Layout plumbing (XLA): channel-major transposed im2col and weight reshapes
# ---------------------------------------------------------------------------
def _im2col_T(x_cm, k, dil):
    """x_cm: (C, N, D, H, W) -> (k^3*C, N*Do*Ho*Wo), tap-major, channel-minor."""
    c, n, d, h, w = x_cm.shape
    do, ho, wo = d - dil * (k - 1), h - dil * (k - 1), w - dil * (k - 1)
    cols = []
    for kd in range(k):
        for kh in range(k):
            for kw in range(k):
                sl = x_cm[:, :, kd * dil:kd * dil + do,
                          kh * dil:kh * dil + ho,
                          kw * dil:kw * dil + wo]
                cols.append(sl.reshape(c, n * do * ho * wo))
    return jnp.concatenate(cols, axis=0), (do, ho, wo)


def _w_to_T(w_oikkk):
    """(Cout, Cin, kD, kH, kW) -> (Cout, kD*kH*kW*Cin), matching _im2col_T order."""
    co = w_oikkk.shape[0]
    return jnp.transpose(w_oikkk, (0, 2, 3, 4, 1)).reshape(co, -1)


# ---------------------------------------------------------------------------
# BasicBlock forward
# ---------------------------------------------------------------------------
def basic_block_forward(x_ncdhw, params, *, tm=TM):
    x = x_ncdhw.astype(jnp.float32)
    n, cin = x.shape[0], x.shape[1]
    x_cm = jnp.transpose(x, (1, 0, 2, 3, 4))          # (Cin, N, D, H, W)

    # ---- conv1 (k=3, dil=2): pre-BN output + BN1 stats ----
    p1, (od1, oh1, ow1) = _im2col_T(x_cm, 3, 2)
    m1 = n * od1 * oh1 * ow1
    # pad M to a multiple of 2*TM -> even grid length (both v7x TCs get work)
    p1 = _pad_to(_pad_to(p1, 0, 128), 1, 2 * tm).astype(jnp.bfloat16)
    w1T = _pad_to(_w_to_T(params["w1"]), 1, 128).astype(jnp.bfloat16)
    c1 = w1T.shape[0]

    y1, st1 = conv_stats(w1T, p1, tm=tm)              # y1 is pre-BN, bf16
    sc1, sh1 = _bn_scale_shift(st1, c1, m1, params["g1"], params["be1"])

    # ---- conv2 (k=3, dil=2) with fused BN1-apply+relu, + downsample stats ----
    y1_cm = y1[:, :m1].reshape(c1, n, od1, oh1, ow1)
    p2, (od2, oh2, ow2) = _im2col_T(y1_cm, 3, 2)      # im2col of *pre-BN* y1
    m2 = n * od2 * oh2 * ow2
    p2 = _pad_to(_pad_to(p2, 0, 128), 1, 2 * tm)      # already bf16
    w2T = _pad_to(_w_to_T(params["w2"]), 1, 128).astype(jnp.bfloat16)
    c2 = w2T.shape[0]

    # per-row BN1 scale/shift (row = tap*C1 + channel); zero in K padding
    sc1k = _pad_to(jnp.tile(sc1, (27, 1)), 0, 128).astype(jnp.float32)
    sh1k = _pad_to(jnp.tile(sh1, (27, 1)), 0, 128).astype(jnp.float32)

    # residual operand for the 1x1x1 downsample conv
    res = x_cm[:, :, 4:-4, 4:-4, 4:-4].reshape(cin, m2)
    res = _pad_to(_pad_to(res, 0, 16), 1, 2 * tm).astype(jnp.bfloat16)
    wdT = _pad_to(params["wd"].reshape(c2, cin), 1, 16).astype(jnp.bfloat16)

    y2, st2, std = conv2_fused(w2T, p2, sc1k, sh1k, wdT, res,
                               m_valid=m2, tm=tm)
    sc2, sh2 = _bn_scale_shift(st2, c2, m2, params["g2"], params["be2"])
    scd, shd = _bn_scale_shift(std, c2, m2, params["gd"], params["bed"])

    # ---- BN2 apply + recomputed downsample + BNd + add + relu ----
    # (keep f32 output for the correctness check; switch to bf16 if the
    #  downstream consumer accepts it — halves the final store stream on v5e)
    out = final_apply(y2, sc2, sh2, wdT, res, scd, shd,
                      out_dtype=jnp.float32, tm=tm)
    out = out[:, :m2].reshape(c2, n, od2, oh2, ow2)
    return jnp.transpose(out, (1, 0, 2, 3, 4))        # back to NCDHW


# ---------------------------------------------------------------------------
# Pure-JAX f32 reference (correctness check only; keeps the conv biases)
# ---------------------------------------------------------------------------
def reference(x, params):
    def conv3d(x, w, b, dil):
        y = jax.lax.conv_general_dilated(
            x, w, window_strides=(1, 1, 1), padding="VALID",
            rhs_dilation=(dil, dil, dil),
            dimension_numbers=("NCDHW", "OIDHW", "NCDHW"),
            precision=jax.lax.Precision.HIGHEST)
        return y + b.reshape(1, -1, 1, 1, 1)

    def bn(y, g, be):
        mean = jnp.mean(y, axis=(0, 2, 3, 4), keepdims=True)
        var = jnp.mean((y - mean) ** 2, axis=(0, 2, 3, 4), keepdims=True)
        return ((y - mean) * jax.lax.rsqrt(var + EPS) * g.reshape(1, -1, 1, 1, 1)
                + be.reshape(1, -1, 1, 1, 1))

    residual = x[:, :, 4:-4, 4:-4, 4:-4]
    h = jax.nn.relu(bn(conv3d(x, params["w1"], params["b1"], 2),
                       params["g1"], params["be1"]))
    h = bn(conv3d(h, params["w2"], params["b2"], 2), params["g2"], params["be2"])
    r = bn(conv3d(residual, params["wd"], params["bd"], 1),
           params["gd"], params["bed"])
    return jax.nn.relu(h + r)


if __name__ == "__main__":
    key = jax.random.PRNGKey(0)
    N, Cin, S = 2, 4, 16           # input spatial 16 -> conv1: 12 -> conv2: 8
    C1, C2 = 8, 16                 # outplanes1, outplanes2 (Cin != C2 => downsample)

    ks = jax.random.split(key, 7)
    x = jax.random.normal(ks[0], (N, Cin, S, S, S), jnp.float32)

    params = {
        # conv weights ~ N(0, 0.01) like m.weight.data.normal_(0, 0.01)
        "w1": 0.01 * jax.random.normal(ks[1], (C1, Cin, 3, 3, 3), jnp.float32),
        "b1": 0.05 * jax.random.normal(ks[2], (C1,), jnp.float32),
        "w2": 0.01 * jax.random.normal(ks[3], (C2, C1, 3, 3, 3), jnp.float32),
        "b2": 0.05 * jax.random.normal(ks[4], (C2,), jnp.float32),
        "wd": 0.01 * jax.random.normal(ks[5], (C2, Cin, 1, 1, 1), jnp.float32),
        "bd": 0.05 * jax.random.normal(ks[6], (C2,), jnp.float32),
        # BatchNorm: weight=1, bias=0 as in __init__
        "g1": jnp.ones((C1,), jnp.float32), "be1": jnp.zeros((C1,), jnp.float32),
        "g2": jnp.ones((C2,), jnp.float32), "be2": jnp.zeros((C2,), jnp.float32),
        "gd": jnp.ones((C2,), jnp.float32), "bed": jnp.zeros((C2,), jnp.float32),
    }

    fwd = jax.jit(basic_block_forward)
    out = jax.block_until_ready(fwd(x, params))
    ref = jax.block_until_ready(reference(x, params))

    assert out.shape == (N, C2, S - 8, S - 8, S - 8), out.shape
    max_err = float(jnp.max(jnp.abs(out - ref)))
    # Tolerance reflects bf16 MXU inputs and bf16 HBM intermediates (f32
    # accumulation / f32 BN stats) through two stacked convs + BatchNorm;
    # reference conv biases are intentionally absorbed by training-mode BN.
    assert jnp.allclose(out, ref, rtol=3e-2, atol=3e-2), f"max abs err = {max_err}"
    print("KERNEL_OK")
</pallas_src>

<mosaic_0001>
module attributes {stable_mosaic.version = 11 : i64} {
  func.func @_conv_stats_kernel(%arg0: i32, %arg1: memref<8x128xbf16, #tpu.memory_space<vmem>>, %arg2: memref<128x512xbf16, #tpu.memory_space<vmem>>, %arg3: memref<8x512xbf16, #tpu.memory_space<vmem>>, %arg4: memref<1x16x1xf32, #tpu.memory_space<vmem>>) attributes {dimension_semantics = [#tpu.dimension_semantics<parallel>], iteration_bounds = array<i64: 8>, scalar_prefetch = 0 : i64, scratch_operands = 0 : i64, tpu.core_type = #tpu.core_type<tc>, window_params = [{pipeline_mode = #tpu.pipeline_mode<synchronous>, transform_indices = @transform_0, window_bounds = array<i64: 8, 128>}, {transform_indices = @transform_1, window_bounds = array<i64: 128, 512>}, {transform_indices = @transform_2, window_bounds = array<i64: 8, 512>}, {transform_indices = @transform_3, window_bounds = array<i64: 1, 16, 1>}]} {
    %c0 = arith.constant 0 : index
    %c0_0 = arith.constant 0 : index
    %0 = vector.load %arg1[%c0, %c0_0] : memref<8x128xbf16, #tpu.memory_space<vmem>>, vector<8x128xbf16>
    %c0_1 = arith.constant 0 : index
    %c0_2 = arith.constant 0 : index
    %1 = vector.load %arg2[%c0_1, %c0_2] : memref<128x512xbf16, #tpu.memory_space<vmem>>, vector<128x512xbf16>
    %cst = arith.constant dense<0.000000e+00> : vector<8x512xf32>
    %2 = tpu.matmul %0, %1, %cst {dimension_numbers = #tpu.dot_dimension_numbers<[1], [0], [0], [1], [0, 0, 1, 1], [], []>} : vector<8x128xbf16>, vector<128x512xbf16>, vector<8x512xf32> -> vector<8x512xf32>
    %3 = arith.truncf %2 : vector<8x512xf32> to vector<8x512xbf16>
    %c0_3 = arith.constant 0 : index
    %c0_4 = arith.constant 0 : index
    %4 = vector.load %arg3[%c0_3, %c0_4] : memref<8x512xbf16, #tpu.memory_space<vmem>>, vector<8x512xbf16>
    tpu.vector_store %arg3[%c0_3, %c0_4], %3 {strides = array<i32>} : memref<8x512xbf16, #tpu.memory_space<vmem>>, vector<8x512xbf16>,
    %cst_5 = arith.constant dense<0.000000e+00> : vector<8xf32>
    %5 = vector.multi_reduction <add>, %2, %cst_5 [1] : vector<8x512xf32> to vector<8xf32>
    %6 = vector.shape_cast %5 : vector<8xf32> to vector<8x1xf32>
    %7 = arith.mulf %2, %2 : vector<8x512xf32>
    %cst_6 = arith.constant dense<0.000000e+00> : vector<8xf32>
    %8 = vector.multi_reduction <add>, %7, %cst_6 [1] : vector<8x512xf32> to vector<8xf32>
    %9 = vector.shape_cast %8 : vector<8xf32> to vector<8x1xf32>
    %10 = tpu.concatenate %6, %9 in 0 : vector<8x1xf32>, vector<8x1xf32> -> vector<16x1xf32>
    %c0_7 = arith.constant 0 : index
    %c0_8 = arith.constant 0 : index
    %c0_9 = arith.constant 0 : index
    %11 = vector.load %arg4[%c0_7, %c0_8, %c0_9] : memref<1x16x1xf32, #tpu.memory_space<vmem>>, vector<1x16x1xf32>
    %12 = vector.shape_cast %11 : vector<1x16x1xf32> to vector<16x1xf32>
    %13 = vector.shape_cast %10 : vector<16x1xf32> to vector<1x16x1xf32>
    tpu.vector_store %arg4[%c0_7, %c0_8, %c0_9], %13 {strides = array<i32>} : memref<1x16x1xf32, #tpu.memory_space<vmem>>, vector<1x16x1xf32>,
    return
  }
  func.func @transform_0(%arg0: i32) -> (i32, i32) {
    %c0_i32 = arith.constant 0 : i32
    %c0_i32_0 = arith.constant 0 : i32
    %c0_i32_1 = arith.constant 0 : i32
    return %c0_i32, %c0_i32_0 : i32, i32
  }
  func.func @transform_1(%arg0: i32) -> (i32, i32) {
    %c0_i32 = arith.constant 0 : i32
    %c0_i32_0 = arith.constant 0 : i32
    return %c0_i32, %arg0 : i32, i32
  }
  func.func @transform_2(%arg0: i32) -> (i32, i32) {
    %c0_i32 = arith.constant 0 : i32
    %c0_i32_0 = arith.constant 0 : i32
    return %c0_i32, %arg0 : i32, i32
  }
  func.func @transform_3(%arg0: i32) -> (i32, i32, i32) {
    %c0_i32 = arith.constant 0 : i32
    %c0_i32_0 = arith.constant 0 : i32
    %c0_i32_1 = arith.constant 0 : i32
    return %arg0, %c0_i32, %c0_i32_0 : i32, i32, i32
  }
}

module attributes {stable_mosaic.version = 11 : i64} {
  func.func @_conv2_fused_kernel(%arg0: i32, %arg1: memref<16x256xbf16, #tpu.memory_space<vmem>>, %arg2: memref<256x512xbf16, #tpu.memory_space<vmem>>, %arg3: memref<256x1xf32, #tpu.memory_space<vmem>>, %arg4: memref<256x1xf32, #tpu.memory_space<vmem>>, %arg5: memref<16x16xbf16, #tpu.memory_space<vmem>>, %arg6: memref<16x512xbf16, #tpu.memory_space<vmem>>, %arg7: memref<16x512xbf16, #tpu.memory_space<vmem>>, %arg8: memref<1x32x1xf32, #tpu.memory_space<vmem>>, %arg9: memref<1x32x1xf32, #tpu.memory_space<vmem>>) attributes {dimension_semantics = [#tpu.dimension_semantics<parallel>], iteration_bounds = array<i64: 2>, scalar_prefetch = 0 : i64, scratch_operands = 0 : i64, tpu.core_type = #tpu.core_type<tc>, window_params = [{pipeline_mode = #tpu.pipeline_mode<synchronous>, transform_indices = @transform_0, window_bounds = array<i64: 16, 256>}, {transform_indices = @transform_1, window_bounds = array<i64: 256, 512>}, {pipeline_mode = #tpu.pipeline_mode<synchronous>, transform_indices = @transform_2, window_bounds = array<i64: 256, 1>}, {pipeline_mode = #tpu.pipeline_mode<synchronous>, transform_indices = @transform_3, window_bounds = array<i64: 256, 1>}, {pipeline_mode = #tpu.pipeline_mode<synchronous>, transform_indices = @transform_4, window_bounds = array<i64: 16, 16>}, {transform_indices = @transform_5, window_bounds = array<i64: 16, 512>}, {transform_indices = @transform_6, window_bounds = array<i64: 16, 512>}, {transform_indices = @transform_7, window_bounds = array<i64: 1, 32, 1>}, {transform_indices = @transform_8, window_bounds = array<i64: 1, 32, 1>}]} {
    %c0 = arith.constant 0 : index
    %c0_0 = arith.constant 0 : index
    %0 = vector.load %arg2[%c0, %c0_0] : memref<256x512xbf16, #tpu.memory_space<vmem>>, vector<256x512xbf16>
    %1 = arith.extf %0 : vector<256x512xbf16> to vector<256x512xf32>
    %c0_1 = arith.constant 0 : index
    %c0_2 = arith.constant 0 : index
    %2 = vector.load %arg3[%c0_1, %c0_2] : memref<256x1xf32, #tpu.memory_space<vmem>>, vector<256x1xf32>
    %3 = vector.broadcast %2 : vector<256x1xf32> to vector<256x512xf32>
    %4 = arith.mulf %1, %3 : vector<256x512xf32>
    %c0_3 = arith.constant 0 : index
    %c0_4 = arith.constant 0 : index
    %5 = vector.load %arg4[%c0_3, %c0_4] : memref<256x1xf32, #tpu.memory_space<vmem>>, vector<256x1xf32>
    %6 = vector.broadcast %5 : vector<256x1xf32> to vector<256x512xf32>
    %7 = arith.addf %4, %6 : vector<256x512xf32>
    %cst = arith.constant 0.000000e+00 : f32
    %8 = vector.broadcast %cst : f32 to vector<256x512xf32>
    %9 = arith.maximumf %7, %8 : vector<256x512xf32>
    %c0_5 = arith.constant 0 : index
    %c0_6 = arith.constant 0 : index
    %10 = vector.load %arg1[%c0_5, %c0_6] : memref<16x256xbf16, #tpu.memory_space<vmem>>, vector<16x256xbf16>
    %11 = arith.truncf %9 : vector<256x512xf32> to vector<256x512xbf16>
    %cst_7 = arith.constant dense<0.000000e+00> : vector<16x512xf32>
    %12 = tpu.matmul %10, %11, %cst_7 {dimension_numbers = #tpu.dot_dimension_numbers<[1], [0], [0], [1], [0, 0, 1, 1], [], []>} : vector<16x256xbf16>, vector<256x512xbf16>, vector<16x512xf32> -> vector<16x512xf32>
    %13 = arith.truncf %12 : vector<16x512xf32> to vector<16x512xbf16>
    %c0_8 = arith.constant 0 : index
    %c0_9 = arith.constant 0 : index
    %14 = vector.load %arg7[%c0_8, %c0_9] : memref<16x512xbf16, #tpu.memory_space<vmem>>, vector<16x512xbf16>
    tpu.vector_store %arg7[%c0_8, %c0_9], %13 {strides = array<i32>} : memref<16x512xbf16, #tpu.memory_space<vmem>>, vector<16x512xbf16>,
    %cst_10 = arith.constant dense<0.000000e+00> : vector<16xf32>
    %15 = vector.multi_reduction <add>, %12, %cst_10 [1] : vector<16x512xf32> to vector<16xf32>
    %16 = vector.shape_cast %15 : vector<16xf32> to vector<16x1xf32>
    %17 = arith.mulf %12, %12 : vector<16x512xf32>
    %cst_11 = arith.constant dense<0.000000e+00> : vector<16xf32>
    %18 = vector.multi_reduction <add>, %17, %cst_11 [1] : vector<16x512xf32> to vector<16xf32>
    %19 = vector.shape_cast %18 : vector<16xf32> to vector<16x1xf32>
    %20 = tpu.concatenate %16, %19 in 0 : vector<16x1xf32>, vector<16x1xf32> -> vector<32x1xf32>
    %c0_12 = arith.constant 0 : index
    %c0_13 = arith.constant 0 : index
    %c0_14 = arith.constant 0 : index
    %21 = vector.load %arg8[%c0_12, %c0_13, %c0_14] : memref<1x32x1xf32, #tpu.memory_space<vmem>>, vector<1x32x1xf32>
    %22 = vector.shape_cast %21 : vector<1x32x1xf32> to vector<32x1xf32>
    %23 = vector.shape_cast %20 : vector<32x1xf32> to vector<1x32x1xf32>
    tpu.vector_store %arg8[%c0_12, %c0_13, %c0_14], %23 {strides = array<i32>} : memref<1x32x1xf32, #tpu.memory_space<vmem>>, vector<1x32x1xf32>,
    %c0_15 = arith.constant 0 : index
    %c0_16 = arith.constant 0 : index
    %24 = vector.load %arg5[%c0_15, %c0_16] : memref<16x16xbf16, #tpu.memory_space<vmem>>, vector<16x16xbf16>
    %c0_17 = arith.constant 0 : index
    %c0_18 = arith.constant 0 : index
    %25 = vector.load %arg6[%c0_17, %c0_18] : memref<16x512xbf16, #tpu.memory_space<vmem>>, vector<16x512xbf16>
    %cst_19 = arith.constant dense<0.000000e+00> : vector<16x512xf32>
    %26 = tpu.matmul %24, %25, %cst_19 {dimension_numbers = #tpu.dot_dimension_numbers<[1], [0], [0], [1], [0, 0, 1, 1], [], []>} : vector<16x16xbf16>, vector<16x512xbf16>, vector<16x512xf32> -> vector<16x512xf32>
    %cst_20 = arith.constant dense<0.000000e+00> : vector<16xf32>
    %27 = vector.multi_reduction <add>, %26, %cst_20 [1] : vector<16x512xf32> to vector<16xf32>
    %28 = vector.shape_cast %27 : vector<16xf32> to vector<16x1xf32>
    %29 = arith.mulf %26, %26 : vector<16x512xf32>
    %cst_21 = arith.constant dense<0.000000e+00> : vector<16xf32>
    %30 = vector.multi_reduction <add>, %29, %cst_21 [1] : vector<16x512xf32> to vector<16xf32>
    %31 = vector.shape_cast %30 : vector<16xf32> to vector<16x1xf32>
    %32 = tpu.concatenate %28, %31 in 0 : vector<16x1xf32>, vector<16x1xf32> -> vector<32x1xf32>
    %c0_22 = arith.constant 0 : index
    %c0_23 = arith.constant 0 : index
    %c0_24 = arith.constant 0 : index
    %33 = vector.load %arg9[%c0_22, %c0_23, %c0_24] : memref<1x32x1xf32, #tpu.memory_space<vmem>>, vector<1x32x1xf32>
    %34 = vector.shape_cast %33 : vector<1x32x1xf32> to vector<32x1xf32>
    %35 = vector.shape_cast %32 : vector<32x1xf32> to vector<1x32x1xf32>
    tpu.vector_store %arg9[%c0_22, %c0_23, %c0_24], %35 {strides = array<i32>} : memref<1x32x1xf32, #tpu.memory_space<vmem>>, vector<1x32x1xf32>,
    return
  }
  func.func @transform_0(%arg0: i32) -> (i32, i32) {
    %c0_i32 = arith.constant 0 : i32
    %c0_i32_0 = arith.constant 0 : i32
    %c0_i32_1 = arith.constant 0 : i32
    return %c0_i32, %c0_i32_0 : i32, i32
  }
  func.func @transform_1(%arg0: i32) -> (i32, i32) {
    %c0_i32 = arith.constant 0 : i32
    %c0_i32_0 = arith.constant 0 : i32
    return %c0_i32, %arg0 : i32, i32
  }
  func.func @transform_2(%arg0: i32) -> (i32, i32) {
    %c0_i32 = arith.constant 0 : i32
    %c0_i32_0 = arith.constant 0 : i32
    %c0_i32_1 = arith.constant 0 : i32
    return %c0_i32, %c0_i32_0 : i32, i32
  }
  func.func @transform_3(%arg0: i32) -> (i32, i32) {
    %c0_i32 = arith.constant 0 : i32
    %c0_i32_0 = arith.constant 0 : i32
    %c0_i32_1 = arith.constant 0 : i32
    return %c0_i32, %c0_i32_0 : i32, i32
  }
  func.func @transform_4(%arg0: i32) -> (i32, i32) {
    %c0_i32 = arith.constant 0 : i32
    %c0_i32_0 = arith.constant 0 : i32
    %c0_i32_1 = arith.constant 0 : i32
    return %c0_i32, %c0_i32_0 : i32, i32
  }
  func.func @transform_5(%arg0: i32) -> (i32, i32) {
    %c0_i32 = arith.constant 0 : i32
    %c0_i32_0 = arith.constant 0 : i32
    return %c0_i32, %arg0 : i32, i32
  }
  func.func @transform_6(%arg0: i32) -> (i32, i32) {
    %c0_i32 = arith.constant 0 : i32
    %c0_i32_0 = arith.constant 0 : i32
    return %c0_i32, %arg0 : i32, i32
  }
  func.func @transform_7(%arg0: i32) -> (i32, i32, i32) {
    %c0_i32 = arith.constant 0 : i32
    %c0_i32_0 = arith.constant 0 : i32
    %c0_i32_1 = arith.constant 0 : i32
    return %arg0, %c0_i32, %c0_i32_0 : i32, i32, i32
  }
  func.func @transform_8(%arg0: i32) -> (i32, i32, i32) {
    %c0_i32 = arith.constant 0 : i32
    %c0_i32_0 = arith.constant 0 : i32
    %c0_i32_1 = arith.constant 0 : i32
    return %arg0, %c0_i32, %c0_i32_0 : i32, i32, i32
  }
}

module attributes {stable_mosaic.version = 11 : i64} {
  func.func @_final_apply_kernel(%arg0: i32, %arg1: memref<16x512xbf16, #tpu.memory_space<vmem>>, %arg2: memref<16x1xf32, #tpu.memory_space<vmem>>, %arg3: memref<16x1xf32, #tpu.memory_space<vmem>>, %arg4: memref<16x16xbf16, #tpu.memory_space<vmem>>, %arg5: memref<16x512xbf16, #tpu.memory_space<vmem>>, %arg6: memref<16x1xf32, #tpu.memory_space<vmem>>, %arg7: memref<16x1xf32, #tpu.memory_space<vmem>>, %arg8: memref<16x512xf32, #tpu.memory_space<vmem>>) attributes {dimension_semantics = [#tpu.dimension_semantics<parallel>], iteration_bounds = array<i64: 2>, scalar_prefetch = 0 : i64, scratch_operands = 0 : i64, tpu.core_type = #tpu.core_type<tc>, window_params = [{transform_indices = @transform_0, window_bounds = array<i64: 16, 512>}, {pipeline_mode = #tpu.pipeline_mode<synchronous>, transform_indices = @transform_1, window_bounds = array<i64: 16, 1>}, {pipeline_mode = #tpu.pipeline_mode<synchronous>, transform_indices = @transform_2, window_bounds = array<i64: 16, 1>}, {pipeline_mode = #tpu.pipeline_mode<synchronous>, transform_indices = @transform_3, window_bounds = array<i64: 16, 16>}, {transform_indices = @transform_4, window_bounds = array<i64: 16, 512>}, {pipeline_mode = #tpu.pipeline_mode<synchronous>, transform_indices = @transform_5, window_bounds = array<i64: 16, 1>}, {pipeline_mode = #tpu.pipeline_mode<synchronous>, transform_indices = @transform_6, window_bounds = array<i64: 16, 1>}, {transform_indices = @transform_7, window_bounds = array<i64: 16, 512>}]} {
    %c0 = arith.constant 0 : index
    %c0_0 = arith.constant 0 : index
    %0 = vector.load %arg1[%c0, %c0_0] : memref<16x512xbf16, #tpu.memory_space<vmem>>, vector<16x512xbf16>
    %1 = arith.extf %0 : vector<16x512xbf16> to vector<16x512xf32>
    %c0_1 = arith.constant 0 : index
    %c0_2 = arith.constant 0 : index
    %2 = vector.load %arg2[%c0_1, %c0_2] : memref<16x1xf32, #tpu.memory_space<vmem>>, vector<16x1xf32>
    %3 = vector.broadcast %2 : vector<16x1xf32> to vector<16x512xf32>
    %4 = arith.mulf %1, %3 : vector<16x512xf32>
    %c0_3 = arith.constant 0 : index
    %c0_4 = arith.constant 0 : index
    %5 = vector.load %arg3[%c0_3, %c0_4] : memref<16x1xf32, #tpu.memory_space<vmem>>, vector<16x1xf32>
    %6 = vector.broadcast %5 : vector<16x1xf32> to vector<16x512xf32>
    %7 = arith.addf %4, %6 : vector<16x512xf32>
    %c0_5 = arith.constant 0 : index
    %c0_6 = arith.constant 0 : index
    %8 = vector.load %arg4[%c0_5, %c0_6] : memref<16x16xbf16, #tpu.memory_space<vmem>>, vector<16x16xbf16>
    %c0_7 = arith.constant 0 : index
    %c0_8 = arith.constant 0 : index
    %9 = vector.load %arg5[%c0_7, %c0_8] : memref<16x512xbf16, #tpu.memory_space<vmem>>, vector<16x512xbf16>
    %cst = arith.constant dense<0.000000e+00> : vector<16x512xf32>
    %10 = tpu.matmul %8, %9, %cst {dimension_numbers = #tpu.dot_dimension_numbers<[1], [0], [0], [1], [0, 0, 1, 1], [], []>} : vector<16x16xbf16>, vector<16x512xbf16>, vector<16x512xf32> -> vector<16x512xf32>
    %c0_9 = arith.constant 0 : index
    %c0_10 = arith.constant 0 : index
    %11 = vector.load %arg6[%c0_9, %c0_10] : memref<16x1xf32, #tpu.memory_space<vmem>>, vector<16x1xf32>
    %12 = vector.broadcast %11 : vector<16x1xf32> to vector<16x512xf32>
    %13 = arith.mulf %10, %12 : vector<16x512xf32>
    %c0_11 = arith.constant 0 : index
    %c0_12 = arith.constant 0 : index
    %14 = vector.load %arg7[%c0_11, %c0_12] : memref<16x1xf32, #tpu.memory_space<vmem>>, vector<16x1xf32>
    %15 = vector.broadcast %14 : vector<16x1xf32> to vector<16x512xf32>
    %16 = arith.addf %13, %15 : vector<16x512xf32>
    %17 = arith.addf %7, %16 : vector<16x512xf32>
    %cst_13 = arith.constant 0.000000e+00 : f32
    %18 = vector.broadcast %cst_13 : f32 to vector<16x512xf32>
    %19 = arith.maximumf %17, %18 : vector<16x512xf32>
    %c0_14 = arith.constant 0 : index
    %c0_15 = arith.constant 0 : index
    %20 = vector.load %arg8[%c0_14, %c0_15] : memref<16x512xf32, #tpu.memory_space<vmem>>, vector<16x512xf32>
    tpu.vector_store %arg8[%c0_14, %c0_15], %19 {strides = array<i32>} : memref<16x512xf32, #tpu.memory_space<vmem>>, vector<16x512xf32>,
    return
  }
  func.func @transform_0(%arg0: i32) -> (i32, i32) {
    %c0_i32 = arith.constant 0 : i32
    %c0_i32_0 = arith.constant 0 : i32
    return %c0_i32, %arg0 : i32, i32
  }
  func.func @transform_1(%arg0: i32) -> (i32, i32) {
    %c0_i32 = arith.constant 0 : i32
    %c0_i32_0 = arith.constant 0 : i32
    %c0_i32_1 = arith.constant 0 : i32
    return %c0_i32, %c0_i32_0 : i32, i32
  }
  func.func @transform_2(%arg0: i32) -> (i32, i32) {
    %c0_i32 = arith.constant 0 : i32
    %c0_i32_0 = arith.constant 0 : i32
    %c0_i32_1 = arith.constant 0 : i32
    return %c0_i32, %c0_i32_0 : i32, i32
  }
  func.func @transform_3(%arg0: i32) -> (i32, i32) {
    %c0_i32 = arith.constant 0 : i32
    %c0_i32_0 = arith.constant 0 : i32
    %c0_i32_1 = arith.constant 0 : i32
    return %c0_i32, %c0_i32_0 : i32, i32
  }
  func.func @transform_4(%arg0: i32) -> (i32, i32) {
    %c0_i32 = arith.constant 0 : i32
    %c0_i32_0 = arith.constant 0 : i32
    return %c0_i32, %arg0 : i32, i32
  }
  func.func @transform_5(%arg0: i32) -> (i32, i32) {
    %c0_i32 = arith.constant 0 : i32
    %c0_i32_0 = arith.constant 0 : i32
    %c0_i32_1 = arith.constant 0 : i32
    return %c0_i32, %c0_i32_0 : i32, i32
  }
  func.func @transform_6(%arg0: i32) -> (i32, i32) {
    %c0_i32 = arith.constant 0 : i32
    %c0_i32_0 = arith.constant 0 : i32
    %c0_i32_1 = arith.constant 0 : i32
    return %c0_i32, %c0_i32_0 : i32, i32
  }
  func.func @transform_7(%arg0: i32) -> (i32, i32) {
    %c0_i32 = arith.constant 0 : i32
    %c0_i32_0 = arith.constant 0 : i32
    return %c0_i32, %arg0 : i32, i32
  }
}

</mosaic_0001>

<bundles_post_ra>
// kernel: basic_block_forward.3
= control target key start
LH: loop header
LB: loop body
LE: loop exit
PB: predicated region body
PF: predicated region fallthrough
CT: control target
= control target key end

     0   :  { %s845_s12 = smov 0   ;;  %s847_s13 = smov 0   ;;  %s1008_s0 = inlined_call_operand.vmem [shape: bf16[8,128], index: 0, kind: input, shape index: {}]   ;;  %s1009_s1 = inlined_call_operand.vmem [shape: bf16[128,4096], index: 1, kind: input, shape index: {}]   ;;  %s1010_s2 = inlined_call_operand.vmem [shape: bf16[8,4096], index: 2, kind: output, shape index: {0}]   ;;  %s1011_s3 = inlined_call_operand.vmem [shape: f32[8,16,1], index: 3, kind: output, shape index: {1}]  }
   0x1   :  { %s849_s14 = smov 0  }
   0x2 LB: > { %s861_s15 = sadd.s32 4294967295, %s822_s14   ;;  %s864_s16 = sadd.s32 1, %s822_s14   ;;  %s822_s14 = sphi %s849_s14, %s1014_s14   ;;  %s818_s13 = sphi %s847_s13, %s1013_s13   ;;  %s814_s12 = sphi %s845_s12, %s1012_s12  }
   0x3   : > { %s39_s17 = ssub.s32 %s822_s14, %s864_s16  ;;  %s42_s18 = sadd.s32 1, %s818_s13 }
   0x4   : > { %p40_p0 = scmp.eq.s32.totalorder %s39_s17, 0  ;;  %p49_p1 = scmp.ne.s32.totalorder %s818_s13, %s814_s12 }
   0x5   : > { %p50_p2 = scmp.eq.s32.totalorder %s822_s14, 0  ;;  %p677_p4 = scmp.ge.s32.totalorder %s822_s14, 8 }
   0x6   : > { %s873_s19 = scalar_select %p40_p0, %s818_s13, %s42_s18  }
   0x7   : > { %p51_p3 = por %p50_p2, %p49_p1  ;;  %130 = sbr.rel (%p677_p4) target bundleno = 34 (0x22), region = 20 }
   0xe   : > { %133 = sbr.rel (!%p51_p3) target bundleno = 34 (0x22), region = 24  ;;  %s135_s20 = sand.u32 (%p51_p3), 1, %s818_s13  }
   0xf   : > { %s723_s21 = sshll.u32 (%p51_p3), %s822_s14, 4  ;;  %s678_s22 = sshll.u32 (%p51_p3), %s135_s20, 8 }
  0x10   : > { %s881_s25 = scalar_lea.vmem (%p51_p3), %s1009_s1, %s723_s21  ;;  %s886_s26 = scalar_lea.vmem (%p51_p3), [#allocation2], %s678_s22 }
  0x11   : > { %v153_v0 = vld [vmem:[%s881_s25] sm:$0xff] (%p51_p3)  ;;  %v155_v1 = vld [vmem:[%s881_s25 + $0x8] sm:$0xff] (%p51_p3) }
  0x12   : > { %v157_v2 = vld [vmem:[%s881_s25 + $0x80] sm:$0xff] (%p51_p3)  ;;  %154 = vst [vmem:[%s886_s26] sm:$0xff] (%p51_p3), %v153_v0  ;;  %156 = vst [vmem:[%s886_s26 + $0x8] sm:$0xff] (%p51_p3), %v155_v1  ;;  %v159_v3 = vld [vmem:[%s881_s25 + $0x88] sm:$0xff] (%p51_p3) }
  0x13   : > { %158 = vst [vmem:[%s886_s26 + $0x10] sm:$0xff] (%p51_p3), %v157_v2  ;;  %v161_v4 = vld [vmem:[%s881_s25 + $0x100] sm:$0xff] (%p51_p3)  ;;  %v163_v5 = vld [vmem:[%s881_s25 + $0x108] sm:$0xff] (%p51_p3)  ;;  %160 = vst [vmem:[%s886_s26 + $0x18] sm:$0xff] (%p51_p3), %v159_v3 }
  0x14   : > { %162 = vst [vmem:[%s886_s26 + $0x20] sm:$0xff] (%p51_p3), %v161_v4  ;;  %164 = vst [vmem:[%s886_s26 + $0x28] sm:$0xff] (%p51_p3), %v163_v5  ;;  %v165_v6 = vld [vmem:[%s881_s25 + $0x180] sm:$0xff] (%p51_p3)  ;;  %v167_v7 = vld [vmem:[%s881_s25 + $0x188] sm:$0xff] (%p51_p3) }
  0x15   : > { %v169_v8 = vld [vmem:[%s881_s25 + $0x200] sm:$0xff]  ;;  %166 = vst [vmem:[%s886_s26 + $0x30] sm:$0xff] %v165_v6  ;;  %168 = vst [vmem:[%s886_s26 + $0x38] sm:$0xff] %v167_v7  ;;  %v171_v9 = vld [vmem:[%s881_s25 + $0x208] sm:$0xff] }
  0x16   : > { %170 = vst [vmem:[%s886_s26 + $0x40] sm:$0xff] %v169_v8  ;;  %v173_v10 = vld [vmem:[%s881_s25 + $0x280] sm:$0xff]  ;;  %v175_v11 = vld [vmem:[%s881_s25 + $0x288] sm:$0xff]  ;;  %172 = vst [vmem:[%s886_s26 + $0x48] sm:$0xff] %v171_v9 }
  0x17   : > { %174 = vst [vmem:[%s886_s26 + $0x50] sm:$0xff] %v173_v10  ;;  %176 = vst [vmem:[%s886_s26 + $0x58] sm:$0xff] %v175_v11  ;;  %v177_v12 = vld [vmem:[%s881_s25 + $0x300] sm:$0xff]  ;;  %v179_v13 = vld [vmem:[%s881_s25 + $0x308] sm:$0xff] }
  0x18   : > { %v181_v14 = vld [vmem:[%s881_s25 + $0x380] sm:$0xff]  ;;  %178 = vst [vmem:[%s886_s26 + $0x60] sm:$0xff] %v177_v12  ;;  %180 = vst [vmem:[%s886_s26 + $0x68] sm:$0xff] %v179_v13  ;;  %v183_v15 = vld [vmem:[%s881_s25 + $0x388] sm:$0xff] }
  0x19   : > { %182 = vst [vmem:[%s886_s26 + $0x70] sm:$0xff] %v181_v14  ;;  %v185_v16 = vld [vmem:[%s881_s25 + $0x400] sm:$0xff]  ;;  %v187_v17 = vld [vmem:[%s881_s25 + $0x408] sm:$0xff]  ;;  %184 = vst [vmem:[%s886_s26 + $0x78] sm:$0xff] %v183_v15 }
  0x1a   : > { %186 = vst [vmem:[%s886_s26 + $0x80] sm:$0xff] %v185_v16  ;;  %188 = vst [vmem:[%s886_s26 + $0x88] sm:$0xff] %v187_v17  ;;  %v189_v18 = vld [vmem:[%s881_s25 + $0x480] sm:$0xff]  ;;  %v191_v19 = vld [vmem:[%s881_s25 + $0x488] sm:$0xff] }
  0x1b   : > { %v193_v20 = vld [vmem:[%s881_s25 + $0x500] sm:$0xff]  ;;  %190 = vst [vmem:[%s886_s26 + $0x90] sm:$0xff] %v189_v18  ;;  %192 = vst [vmem:[%s886_s26 + $0x98] sm:$0xff] %v191_v19  ;;  %v195_v21 = vld [vmem:[%s881_s25 + $0x508] sm:$0xff] }
  0x1c   : > { %194 = vst [vmem:[%s886_s26 + $0xa0] sm:$0xff] %v193_v20  ;;  %v197_v22 = vld [vmem:[%s881_s25 + $0x580] sm:$0xff]  ;;  %v199_v23 = vld [vmem:[%s881_s25 + $0x588] sm:$0xff]  ;;  %196 = vst [vmem:[%s886_s26 + $0xa8] sm:$0xff] %v195_v21 }
  0x1d   : > { %198 = vst [vmem:[%s886_s26 + $0xb0] sm:$0xff] %v197_v22  ;;  %200 = vst [vmem:[%s886_s26 + $0xb8] sm:$0xff] %v199_v23  ;;  %v201_v24 = vld [vmem:[%s881_s25 + $0x600] sm:$0xff]  ;;  %v203_v25 = vld [vmem:[%s881_s25 + $0x608] sm:$0xff] }
  0x1e   : > { %v205_v26 = vld [vmem:[%s881_s25 + $0x680] sm:$0xff]  ;;  %202 = vst [vmem:[%s886_s26 + $0xc0] sm:$0xff] %v201_v24  ;;  %204 = vst [vmem:[%s886_s26 + $0xc8] sm:$0xff] %v203_v25  ;;  %v207_v27 = vld [vmem:[%s881_s25 + $0x688] sm:$0xff] }
  0x1f   : > { %206 = vst [vmem:[%s886_s26 + $0xd0] sm:$0xff] %v205_v26  ;;  %v209_v28 = vld [vmem:[%s881_s25 + $0x700] sm:$0xff]  ;;  %v211_v29 = vld [vmem:[%s881_s25 + $0x708] sm:$0xff]  ;;  %208 = vst [vmem:[%s886_s26 + $0xd8] sm:$0xff] %v207_v27 }
  0x20   : > { %210 = vst [vmem:[%s886_s26 + $0xe0] sm:$0xff] %v209_v28  ;;  %212 = vst [vmem:[%s886_s26 + $0xe8] sm:$0xff] %v211_v29  ;;  %v213_v30 = vld [vmem:[%s881_s25 + $0x780] sm:$0xff]  ;;  %v215_v31 = vld [vmem:[%s881_s25 + $0x788] sm:$0xff] }
  0x21   : > { %214 = vst [vmem:[%s886_s26 + $0xf0] sm:$0xff] %v213_v30  ;;  %216 = vst [vmem:[%s886_s26 + $0xf8] sm:$0xff] %v215_v31 }
  0x22 PF: > { %p681_p5 = scmp.ge.s32.totalorder %s822_s14, 1  ;;  %p221_p6 = scmp.lt.s32.totalorder %s822_s14, 9 }
  0x24   : > { %p222_p7 = pnand %p681_p5, %p221_p6 }
  0x25   : > { %s228_s27 = sand.u32 (!%p222_p7), 1, %s814_s12   ;;  %v824_v32 = vmov (!%p222_p7), 0   ;;  %v269_v1 = vld [vmem:[%s1008_s0] sm:$0xf] (!%p222_p7)  ;;  %s683_s5 = sshll.u32 (!%p222_p7), %s861_s15, 2  ;;  %vm576_vm0 = vcmask (!%p222_p7), 7168  }
  0x26   : > { %225 = sbr.rel (%p222_p7) target bundleno = 439 (0x1b7), region = 47  ;;  %s682_s28 = sshll.u32 (!%p222_p7), %s228_s27, 8  ;;  %494 = vmatprep.mubr.bf16.mxu0 (!%p222_p7), %v824_v32  ;;  %535 = vmatprep.mubr.bf16.mxu1 (!%p222_p7), %v824_v32 }
  0x27   : > { %s952_s29 = scalar_lea.vmem (!%p222_p7), [#allocation2], %s682_s28  ;;  %p258_p8 = scmp.lt.s32.totalorder (!%p222_p7), %s683_s5, 31 }
  0x28   : > { %v752_v33 = vld [vmem:[%s952_s29 + $0x4] ss:$16 sps:$4 sm:$0xff] (!%p222_p7)   ;;  %v754_v34 = vld [vmem:[%s952_s29 + $0xc] ss:$16 sps:$4 sm:$0xff] (!%p222_p7)   ;;  %v756_v35 = vld [vmem:[%s952_s29] ss:$16 sps:$4 sm:$0xff] (!%p222_p7)  }
  0x29   : > { %462 = vmatprep.subr.bf16.mxu0 (!%p222_p7), %v752_v33  ;;  %v757_v36 = vld [vmem:[%s952_s29 + $0x8] ss:$16 sps:$4 sm:$0xff] (!%p222_p7)   ;;  %503 = vmatprep.subr.bf16.mxu1 (!%p222_p7), %v754_v34  ;;  %v758_v37 = vld [vmem:[%s952_s29 + $0x24] ss:$16 sps:$4 sm:$0xff] (!%p222_p7)   ;;  %v760_v38 = vld [vmem:[%s952_s29 + $0x2c] ss:$16 sps:$4 sm:$0xff] (!%p222_p7)  }
  0x2a   : > { %463 = vmatpush1.bf16.msra.mxu0 (!%p222_p7), %v756_v35  ;;  %504 = vmatpush1.bf16.msra.mxu1 (!%p222_p7), %v757_v36  ;;  %v762_v39 = vld [vmem:[%s952_s29 + $0x20] ss:$16 sps:$4 sm:$0xff] (!%p222_p7)   ;;  %v763_v40 = vld [vmem:[%s952_s29 + $0x28] ss:$16 sps:$4 sm:$0xff] (!%p222_p7)   ;;  %v764_v41 = vld [vmem:[%s952_s29 + $0x44] ss:$16 sps:$4 sm:$0xff] (!%p222_p7)  }
  0x2b   : > { %464 = vmatprep.subr.bf16.mxu0 (!%p222_p7), %v758_v37  ;;  %505 = vmatprep.subr.bf16.mxu1 (!%p222_p7), %v760_v38  ;;  %v766_v42 = vld [vmem:[%s952_s29 + $0x4c] ss:$16 sps:$4 sm:$0xff] (!%p222_p7)   ;;  %v768_v43 = vld [vmem:[%s952_s29 + $0x40] ss:$16 sps:$4 sm:$0xff] (!%p222_p7)   ;;  %v769_v44 = vld [vmem:[%s952_s29 + $0x48] ss:$16 sps:$4 sm:$0xff] (!%p222_p7)  }
  0x2c   : > { %v770_v45 = vld [vmem:[%s952_s29 + $0x64] ss:$16 sps:$4 sm:$0xff] (!%p222_p7)   ;;  %v772_v46 = vld [vmem:[%s952_s29 + $0x6c] ss:$16 sps:$4 sm:$0xff] (!%p222_p7)   ;;  %v774_v47 = vld [vmem:[%s952_s29 + $0x60] ss:$16 sps:$4 sm:$0xff] (!%p222_p7)  }
  0x2d   : > { %v775_v48 = vld [vmem:[%s952_s29 + $0x68] ss:$16 sps:$4 sm:$0xff]   ;;  %v776_v49 = vld [vmem:[%s952_s29 + $0x84] ss:$16 sps:$4 sm:$0xff]   ;;  %v778_v50 = vld [vmem:[%s952_s29 + $0x8c] ss:$16 sps:$4 sm:$0xff]  }
  0x2e   : > { %465 = vmatpush1.bf16.msra.mxu0 %v762_v39  ;;  %506 = vmatpush1.bf16.msra.mxu1 %v763_v40  ;;  %v780_v51 = vld [vmem:[%s952_s29 + $0x80] ss:$16 sps:$4 sm:$0xff]   ;;  %v781_v52 = vld [vmem:[%s952_s29 + $0x88] ss:$16 sps:$4 sm:$0xff]   ;;  %v782_v53 = vld [vmem:[%s952_s29 + $0xa4] ss:$16 sps:$4 sm:$0xff]  }
  0x2f   : > { %466 = vmatprep.subr.bf16.mxu0 %v764_v41  ;;  %507 = vmatprep.subr.bf16.mxu1 %v766_v42  ;;  %v784_v54 = vld [vmem:[%s952_s29 + $0xac] ss:$16 sps:$4 sm:$0xff]   ;;  %v786_v55 = vld [vmem:[%s952_s29 + $0xa0] ss:$16 sps:$4 sm:$0xff]   ;;  %v787_v56 = vld [vmem:[%s952_s29 + $0xa8] ss:$16 sps:$4 sm:$0xff]  }
  0x30   : > { %v788_v57 = vld [vmem:[%s952_s29 + $0xc4] ss:$16 sps:$4 sm:$0xff]   ;;  %v790_v58 = vld [vmem:[%s952_s29 + $0xcc] ss:$16 sps:$4 sm:$0xff]   ;;  %v792_v59 = vld [vmem:[%s952_s29 + $0xc0] ss:$16 sps:$4 sm:$0xff]  }
  0x31   : > { %v793_v60 = vld [vmem:[%s952_s29 + $0xc8] ss:$16 sps:$4 sm:$0xff]   ;;  %v794_v61 = vld [vmem:[%s952_s29 + $0xe4] ss:$16 sps:$4 sm:$0xff]   ;;  %v796_v62 = vld [vmem:[%s952_s29 + $0xec] ss:$16 sps:$4 sm:$0xff]  }
  0x32   : > { %467 = vmatpush1.bf16.msra.mxu0 %v768_v43  ;;  %508 = vmatpush1.bf16.msra.mxu1 %v769_v44  ;;  %v798_v63 = vld [vmem:[%s952_s29 + $0xe0] ss:$16 sps:$4 sm:$0xff]   ;;  %v799_v0 = vld [vmem:[%s952_s29 + $0xe8] ss:$16 sps:$4 sm:$0xff]   ;;  %s1016_s5 = smov (!%p258_p8, %s683_s5), 31  ;;  %p263_p9 = scmp.lt.s32.totalorder %s861_s15, 7 }
  0x33   : > { %468 = vmatprep.subr.bf16.mxu0 %v770_v45  ;;  %509 = vmatprep.subr.bf16.mxu1 %v772_v46  ;;  %s684_s6 = sshll.u32 %s1016_s5, 2 }
  0x34   : > { %s261_s9 = scalar_lea.vmem %s1010_s2, %s684_s6  ;;  %s1018_s15 = smov (!%p263_p9, %s861_s15), 7 }
  0x35   : > { %s724_s10 = sshll.u32 %s1018_s15, 4 }
  0x36   : > { %469 = vmatpush1.bf16.msra.mxu0 %v774_v47  ;;  %510 = vmatpush1.bf16.msra.mxu1 %v775_v48  ;;  %s267_s14 = scalar_lea.vmem %s1011_s3, %s724_s10 }
  0x37   : > { %470 = vmatprep.subr.bf16.mxu0 %v776_v49  ;;  %511 = vmatprep.subr.bf16.mxu1 %v778_v50 }
  0x3a   : > { %471 = vmatpush1.bf16.msra.mxu0 %v780_v51  ;;  %512 = vmatpush1.bf16.msra.mxu1 %v781_v52 }
  0x3b   : > { %472 = vmatprep.subr.bf16.mxu0 %v782_v53  ;;  %513 = vmatprep.subr.bf16.mxu1 %v784_v54 }
  0x3e   : > { %473 = vmatpush1.bf16.msra.mxu0 %v786_v55  ;;  %514 = vmatpush1.bf16.msra.mxu1 %v787_v56 }
  0x3f   : > { %474 = vmatprep.subr.bf16.mxu0 %v788_v57  ;;  %515 = vmatprep.subr.bf16.mxu1 %v790_v58 }
  0x42   : > { %475 = vmatpush1.bf16.msra.mxu0 %v792_v59  ;;  %516 = vmatpush1.bf16.msra.mxu1 %v793_v60 }
  0x43   : > { %476 = vmatprep.subr.bf16.mxu0 %v794_v61  ;;  %517 = vmatprep.subr.bf16.mxu1 %v796_v62 }
  0x46   : > { %477 = vmatpush1.bf16.msra.mxu0 %v798_v63  ;;  %518 = vmatpush1.bf16.msra.mxu1 %v799_v0 }
  0x49   : > { %495 = vmatmul.mubr.bf16.vlgmr.msra.gmra.mrb[0].mxu0 %v269_v1  ;;  %536 = vmatmul.mubr.bf16.vlgmr.msra.gmra.mrb[0].mxu1 %v269_v1 }
 0x11c   : > { %v496_v2 = vpop.f32.mrb[0].mxu0  ;;  %v537_v3 = vpop.f32.mrb[0].mxu1 }
 0x11d   : > { %v567_v4 = vmul.f32 %v496_v2, %v496_v2  ;;  %v569_v5 = vmul.f32 %v537_v3, %v537_v3  ;;  %v498_v6 = vpop.f32.mrb[1].mxu0  ;;  %v539_v7 = vpop.f32.mrb[1].mxu1 }
 0x11e   : > { %v725_v8 = vpack.c.bf16 %v498_v6, %v496_v2  ;;  %v562_v9 = vadd.f32 %v498_v6, %v496_v2  ;;  %v568_v10 = vmul.f32 %v498_v6, %v498_v6  ;;  %v726_v11 = vpack.c.bf16 %v539_v7, %v537_v3  ;;  %v500_v12 = vpop.f32.mrb[2].mxu0  ;;  %v541_v13 = vpop.f32.mrb[2].mxu1 }
 0x11f   : > { %v501_v14 = vpop.f32.mrb[3].mxu0  ;;  %v542_v15 = vpop.f32.mrb[3].mxu1  ;;  %v570_v19 = vmul.f32 %v539_v7, %v539_v7 }
 0x120   : > { %560 = vst [vmem:[%s261_s9] sm:$0xff] %v725_v8  ;;  %561 = vst [vmem:[%s261_s9 + $0x8] sm:$0xff] %v726_v11  ;;  %v563_v16 = vadd.f32 %v562_v9, %v537_v3  ;;  %v571_v17 = vadd.f32 %v568_v10, %v567_v4 }
 0x122   : > { %v564_v18 = vadd.f32 %v563_v16, %v539_v7  ;;  %v572_v20 = vadd.f32 %v571_v17, %v569_v5 }
 0x124   : > { %565 = vadd.xlane.f32.xlu0 %v564_v18  ;;  %v573_v21 = vadd.f32 %v572_v20, %v570_v19 }
 0x128   : > { %574 = vadd.xlane.f32.xlu0 %v573_v21 }
 0x1b1   : > { %v566_v22 = vpop.xlane.xlu0 %565 }
 0x1b2   : > { %577 = vst.msk [vmem:[%s267_s14] sm:$0xff] %vm576_vm0, %v566_v22 }
 0x1b5   : > { %v575_v23 = vpop.xlane.xlu0 %574 }
 0x1b6   : > { %578 = vst.msk [vmem:[%s267_s14 + $0x8] sm:$0xff] %vm576_vm0, %v575_v23 }
 0x1b7 PF: > { %p11_p10 = scmp.ge.s32.totalorder %s864_s16, 10   ;;  %s1012_s12 = smov %s818_s13 }
 0x1b8   : > { %s1013_s13 = smov %s873_s19  ;;  %s1014_s14 = smov %s864_s16 }
 0x1b9   :  { %13 = sbr.rel (!%p11_p10) target bundleno = 2 (0x2), region = 98 }

// kernel: basic_block_forward.4
= control target key start
LH: loop header
LB: loop body
LE: loop exit
PB: predicated region body
PF: predicated region fallthrough
CT: control target
= control target key end

     0   :  { %s2182_s27 = smov 0   ;;  %s2184_s28 = smov 0   ;;  %s3190_s0 = inlined_call_operand.vmem [shape: bf16[16,256], index: 0, kind: input, shape index: {}]   ;;  %s3191_s1 = inlined_call_operand.vmem [shape: bf16[256,1024], index: 1, kind: input, shape index: {}]   ;;  %s3192_s2 = inlined_call_operand.vmem [shape: f32[256,1], index: 2, kind: input, shape index: {}]   ;;  %s3193_s3 = inlined_call_operand.vmem [shape: f32[256,1], index: 3, kind: input, shape index: {}]   ;;  %s3194_s4 = inlined_call_operand.vmem [shape: bf16[16,16], index: 4, kind: input, shape index: {}]   ;;  %s3195_s5 = inlined_call_operand.vmem [shape: bf16[16,1024], index: 5, kind: input, shape index: {}]   ;;  %s3196_s6 = inlined_call_operand.vmem [shape: bf16[16,1024], index: 6, kind: output, shape index: {0}]   ;;  %s3197_s7 = inlined_call_operand.vmem [shape: f32[2,32,1], index: 7, kind: output, shape index: {1}]   ;;  %s3198_s8 = inlined_call_operand.vmem [shape: f32[2,32,1], index: 8, kind: output, shape index: {2}]  }
   0x1   :  { %s2186_s29 = smov 0  }
   0x2 LB: > { %s2198_s30 = sadd.s32 4294967295, %s2134_s29   ;;  %s2201_s9 = sadd.s32 1, %s2134_s29   ;;  %s2134_s29 = sphi %s2186_s29, %s3285_s29   ;;  %s2130_s28 = sphi %s2184_s28, %s3284_s28   ;;  %s2126_s27 = sphi %s2182_s27, %s3283_s27  }
   0x3   : > { %s44_s10 = ssub.s32 %s2134_s29, %s2201_s9  ;;  %s47_s11 = sadd.s32 1, %s2130_s28 }
   0x4   : > { %p45_p0 = scmp.eq.s32.totalorder %s44_s10, 0  ;;  %p54_p1 = scmp.ne.s32.totalorder %s2130_s28, %s2126_s27 }
   0x5   : > { %p55_p2 = scmp.eq.s32.totalorder %s2134_s29, 0  ;;  %p173_p3 = scmp.eq.s32.totalorder %s2198_s30, 1 }
   0x6   : > { %s2211_s12 = scalar_select %p45_p0, %s2130_s28, %s47_s11  }
   0x7   : > { %p2213_p4 = por %p55_p2, %p54_p1  ;;  %p2217_p5 = por %p173_p3, %p54_p1 }
   0x8   : > { %p2033_p6 = scmp.ge.s32.totalorder %s2134_s29, 2 }
   0xa   : > { %259 = sbr.rel (%p2033_p6) target bundleno = 60 (0x3c), region = 32 }
  0x11   : > { %262 = sbr.rel (!%p2213_p4) target bundleno = 53 (0x35), region = 36  ;;  %s264_s15 = sand.u32 (%p2213_p4), 1, %s2130_s28  }
  0x12   : > { %s2066_s16 = sshll.u32 (%p2213_p4), %s2134_s29, 4  ;;  %s2034_s17 = sshll.u32 (%p2213_p4), %s264_s15, 9 }
  0x13   : > { %s2229_s20 = scalar_lea.vmem (%p2213_p4), %s3191_s1, %s2066_s16  ;;  %s2234_s21 = scalar_lea.vmem (%p2213_p4), [#allocation2], %s2034_s17 }
  0x14   : > { %v282_v0 = vld [vmem:[%s2229_s20] sm:$0xff] (%p2213_p4)  ;;  %v284_v1 = vld [vmem:[%s2229_s20 + $0x8] sm:$0xff] (%p2213_p4) }
  0x15   : > { %v286_v2 = vld [vmem:[%s2229_s20 + $0x20] sm:$0xff] (%p2213_p4)  ;;  %283 = vst [vmem:[%s2234_s21] sm:$0xff] (%p2213_p4), %v282_v0  ;;  %285 = vst [vmem:[%s2234_s21 + $0x8] sm:$0xff] (%p2213_p4), %v284_v1  ;;  %v288_v3 = vld [vmem:[%s2229_s20 + $0x28] sm:$0xff] (%p2213_p4) }
  0x16   : > { %287 = vst [vmem:[%s2234_s21 + $0x10] sm:$0xff] (%p2213_p4), %v286_v2  ;;  %v290_v4 = vld [vmem:[%s2229_s20 + $0x40] sm:$0xff] (%p2213_p4)  ;;  %v292_v5 = vld [vmem:[%s2229_s20 + $0x48] sm:$0xff] (%p2213_p4)  ;;  %289 = vst [vmem:[%s2234_s21 + $0x18] sm:$0xff] (%p2213_p4), %v288_v3 }
  0x17   : > { %291 = vst [vmem:[%s2234_s21 + $0x20] sm:$0xff] (%p2213_p4), %v290_v4  ;;  %293 = vst [vmem:[%s2234_s21 + $0x28] sm:$0xff] (%p2213_p4), %v292_v5  ;;  %v294_v6 = vld [vmem:[%s2229_s20 + $0x60] sm:$0xff] (%p2213_p4)  ;;  %v296_v7 = vld [vmem:[%s2229_s20 + $0x68] sm:$0xff] (%p2213_p4) }
  0x18   : > { %v298_v8 = vld [vmem:[%s2229_s20 + $0x80] sm:$0xff]  ;;  %295 = vst [vmem:[%s2234_s21 + $0x30] sm:$0xff] %v294_v6  ;;  %297 = vst [vmem:[%s2234_s21 + $0x38] sm:$0xff] %v296_v7  ;;  %v300_v9 = vld [vmem:[%s2229_s20 + $0x88] sm:$0xff] }
  0x19   : > { %299 = vst [vmem:[%s2234_s21 + $0x40] sm:$0xff] %v298_v8  ;;  %v302_v10 = vld [vmem:[%s2229_s20 + $0xa0] sm:$0xff]  ;;  %v304_v11 = vld [vmem:[%s2229_s20 + $0xa8] sm:$0xff]  ;;  %301 = vst [vmem:[%s2234_s21 + $0x48] sm:$0xff] %v300_v9 }
  0x1a   : > { %303 = vst [vmem:[%s2234_s21 + $0x50] sm:$0xff] %v302_v10  ;;  %305 = vst [vmem:[%s2234_s21 + $0x58] sm:$0xff] %v304_v11  ;;  %v306_v12 = vld [vmem:[%s2229_s20 + $0xc0] sm:$0xff]  ;;  %v308_v13 = vld [vmem:[%s2229_s20 + $0xc8] sm:$0xff] }
  0x1b   : > { %v310_v14 = vld [vmem:[%s2229_s20 + $0xe0] sm:$0xff]  ;;  %307 = vst [vmem:[%s2234_s21 + $0x60] sm:$0xff] %v306_v12  ;;  %309 = vst [vmem:[%s2234_s21 + $0x68] sm:$0xff] %v308_v13  ;;  %v312_v15 = vld [vmem:[%s2229_s20 + $0xe8] sm:$0xff] }
  0x1c   : > { %311 = vst [vmem:[%s2234_s21 + $0x70] sm:$0xff] %v310_v14  ;;  %v314_v16 = vld [vmem:[%s2229_s20 + $0x100] sm:$0xff]  ;;  %v316_v17 = vld [vmem:[%s2229_s20 + $0x108] sm:$0xff]  ;;  %313 = vst [vmem:[%s2234_s21 + $0x78] sm:$0xff] %v312_v15 }
  0x1d   : > { %315 = vst [vmem:[%s2234_s21 + $0x80] sm:$0xff] %v314_v16  ;;  %317 = vst [vmem:[%s2234_s21 + $0x88] sm:$0xff] %v316_v17  ;;  %v318_v18 = vld [vmem:[%s2229_s20 + $0x120] sm:$0xff]  ;;  %v320_v19 = vld [vmem:[%s2229_s20 + $0x128] sm:$0xff] }
  0x1e   : > { %v322_v20 = vld [vmem:[%s2229_s20 + $0x140] sm:$0xff]  ;;  %319 = vst [vmem:[%s2234_s21 + $0x90] sm:$0xff] %v318_v18  ;;  %321 = vst [vmem:[%s2234_s21 + $0x98] sm:$0xff] %v320_v19  ;;  %v324_v21 = vld [vmem:[%s2229_s20 + $0x148] sm:$0xff] }
  0x1f   : > { %323 = vst [vmem:[%s2234_s21 + $0xa0] sm:$0xff] %v322_v20  ;;  %v326_v22 = vld [vmem:[%s2229_s20 + $0x160] sm:$0xff]  ;;  %v328_v23 = vld [vmem:[%s2229_s20 + $0x168] sm:$0xff]  ;;  %325 = vst [vmem:[%s2234_s21 + $0xa8] sm:$0xff] %v324_v21 }
  0x20   : > { %327 = vst [vmem:[%s2234_s21 + $0xb0] sm:$0xff] %v326_v22  ;;  %329 = vst [vmem:[%s2234_s21 + $0xb8] sm:$0xff] %v328_v23  ;;  %v330_v24 = vld [vmem:[%s2229_s20 + $0x180] sm:$0xff]  ;;  %v332_v25 = vld [vmem:[%s2229_s20 + $0x188] sm:$0xff] }
  0x21   : > { %v334_v26 = vld [vmem:[%s2229_s20 + $0x1a0] sm:$0xff]  ;;  %331 = vst [vmem:[%s2234_s21 + $0xc0] sm:$0xff] %v330_v24  ;;  %333 = vst [vmem:[%s2234_s21 + $0xc8] sm:$0xff] %v332_v25  ;;  %v336_v27 = vld [vmem:[%s2229_s20 + $0x1a8] sm:$0xff] }
  0x22   : > { %335 = vst [vmem:[%s2234_s21 + $0xd0] sm:$0xff] %v334_v26  ;;  %v338_v28 = vld [vmem:[%s2229_s20 + $0x1c0] sm:$0xff]  ;;  %v340_v29 = vld [vmem:[%s2229_s20 + $0x1c8] sm:$0xff]  ;;  %337 = vst [vmem:[%s2234_s21 + $0xd8] sm:$0xff] %v336_v27 }
  0x23   : > { %339 = vst [vmem:[%s2234_s21 + $0xe0] sm:$0xff] %v338_v28  ;;  %341 = vst [vmem:[%s2234_s21 + $0xe8] sm:$0xff] %v340_v29  ;;  %v342_v30 = vld [vmem:[%s2229_s20 + $0x1e0] sm:$0xff]  ;;  %v344_v31 = vld [vmem:[%s2229_s20 + $0x1e8] sm:$0xff] }
  0x24   : > { %v346_v32 = vld [vmem:[%s2229_s20 + $0x200] sm:$0xff]  ;;  %343 = vst [vmem:[%s2234_s21 + $0xf0] sm:$0xff] %v342_v30  ;;  %345 = vst [vmem:[%s2234_s21 + $0xf8] sm:$0xff] %v344_v31  ;;  %v348_v33 = vld [vmem:[%s2229_s20 + $0x208] sm:$0xff] }
  0x25   : > { %347 = vst [vmem:[%s2234_s21 + $0x100] sm:$0xff] %v346_v32  ;;  %v350_v34 = vld [vmem:[%s2229_s20 + $0x220] sm:$0xff]  ;;  %v352_v35 = vld [vmem:[%s2229_s20 + $0x228] sm:$0xff]  ;;  %349 = vst [vmem:[%s2234_s21 + $0x108] sm:$0xff] %v348_v33 }
  0x26   : > { %351 = vst [vmem:[%s2234_s21 + $0x110] sm:$0xff] %v350_v34  ;;  %353 = vst [vmem:[%s2234_s21 + $0x118] sm:$0xff] %v352_v35  ;;  %v354_v36 = vld [vmem:[%s2229_s20 + $0x240] sm:$0xff]  ;;  %v356_v37 = vld [vmem:[%s2229_s20 + $0x248] sm:$0xff] }
  0x27   : > { %v358_v38 = vld [vmem:[%s2229_s20 + $0x260] sm:$0xff]  ;;  %355 = vst [vmem:[%s2234_s21 + $0x120] sm:$0xff] %v354_v36  ;;  %357 = vst [vmem:[%s2234_s21 + $0x128] sm:$0xff] %v356_v37  ;;  %v360_v39 = vld [vmem:[%s2229_s20 + $0x268] sm:$0xff] }
  0x28   : > { %359 = vst [vmem:[%s2234_s21 + $0x130] sm:$0xff] %v358_v38  ;;  %v362_v40 = vld [vmem:[%s2229_s20 + $0x280] sm:$0xff]  ;;  %v364_v41 = vld [vmem:[%s2229_s20 + $0x288] sm:$0xff]  ;;  %361 = vst [vmem:[%s2234_s21 + $0x138] sm:$0xff] %v360_v39 }
  0x29   : > { %363 = vst [vmem:[%s2234_s21 + $0x140] sm:$0xff] %v362_v40  ;;  %365 = vst [vmem:[%s2234_s21 + $0x148] sm:$0xff] %v364_v41  ;;  %v366_v42 = vld [vmem:[%s2229_s20 + $0x2a0] sm:$0xff]  ;;  %v368_v43 = vld [vmem:[%s2229_s20 + $0x2a8] sm:$0xff] }
  0x2a   : > { %v370_v44 = vld [vmem:[%s2229_s20 + $0x2c0] sm:$0xff]  ;;  %367 = vst [vmem:[%s2234_s21 + $0x150] sm:$0xff] %v366_v42  ;;  %369 = vst [vmem:[%s2234_s21 + $0x158] sm:$0xff] %v368_v43  ;;  %v372_v45 = vld [vmem:[%s2229_s20 + $0x2c8] sm:$0xff] }
  0x2b   : > { %371 = vst [vmem:[%s2234_s21 + $0x160] sm:$0xff] %v370_v44  ;;  %v374_v46 = vld [vmem:[%s2229_s20 + $0x2e0] sm:$0xff]  ;;  %v376_v47 = vld [vmem:[%s2229_s20 + $0x2e8] sm:$0xff]  ;;  %373 = vst [vmem:[%s2234_s21 + $0x168] sm:$0xff] %v372_v45 }
  0x2c   : > { %375 = vst [vmem:[%s2234_s21 + $0x170] sm:$0xff] %v374_v46  ;;  %377 = vst [vmem:[%s2234_s21 + $0x178] sm:$0xff] %v376_v47  ;;  %v378_v48 = vld [vmem:[%s2229_s20 + $0x300] sm:$0xff]  ;;  %v380_v49 = vld [vmem:[%s2229_s20 + $0x308] sm:$0xff] }
  0x2d   : > { %v382_v50 = vld [vmem:[%s2229_s20 + $0x320] sm:$0xff]  ;;  %379 = vst [vmem:[%s2234_s21 + $0x180] sm:$0xff] %v378_v48  ;;  %381 = vst [vmem:[%s2234_s21 + $0x188] sm:$0xff] %v380_v49  ;;  %v384_v51 = vld [vmem:[%s2229_s20 + $0x328] sm:$0xff] }
  0x2e   : > { %383 = vst [vmem:[%s2234_s21 + $0x190] sm:$0xff] %v382_v50  ;;  %v386_v52 = vld [vmem:[%s2229_s20 + $0x340] sm:$0xff]  ;;  %v388_v53 = vld [vmem:[%s2229_s20 + $0x348] sm:$0xff]  ;;  %385 = vst [vmem:[%s2234_s21 + $0x198] sm:$0xff] %v384_v51 }
  0x2f   : > { %387 = vst [vmem:[%s2234_s21 + $0x1a0] sm:$0xff] %v386_v52  ;;  %389 = vst [vmem:[%s2234_s21 + $0x1a8] sm:$0xff] %v388_v53  ;;  %v390_v54 = vld [vmem:[%s2229_s20 + $0x360] sm:$0xff]  ;;  %v392_v55 = vld [vmem:[%s2229_s20 + $0x368] sm:$0xff] }
  0x30   : > { %v394_v56 = vld [vmem:[%s2229_s20 + $0x380] sm:$0xff]  ;;  %391 = vst [vmem:[%s2234_s21 + $0x1b0] sm:$0xff] %v390_v54  ;;  %393 = vst [vmem:[%s2234_s21 + $0x1b8] sm:$0xff] %v392_v55  ;;  %v396_v57 = vld [vmem:[%s2229_s20 + $0x388] sm:$0xff] }
  0x31   : > { %395 = vst [vmem:[%s2234_s21 + $0x1c0] sm:$0xff] %v394_v56  ;;  %v398_v58 = vld [vmem:[%s2229_s20 + $0x3a0] sm:$0xff]  ;;  %v400_v59 = vld [vmem:[%s2229_s20 + $0x3a8] sm:$0xff]  ;;  %397 = vst [vmem:[%s2234_s21 + $0x1c8] sm:$0xff] %v396_v57 }
  0x32   : > { %399 = vst [vmem:[%s2234_s21 + $0x1d0] sm:$0xff] %v398_v58  ;;  %401 = vst [vmem:[%s2234_s21 + $0x1d8] sm:$0xff] %v400_v59  ;;  %v402_v60 = vld [vmem:[%s2229_s20 + $0x3c0] sm:$0xff]  ;;  %v404_v61 = vld [vmem:[%s2229_s20 + $0x3c8] sm:$0xff] }
  0x33   : > { %v406_v62 = vld [vmem:[%s2229_s20 + $0x3e0] sm:$0xff]  ;;  %403 = vst [vmem:[%s2234_s21 + $0x1e0] sm:$0xff] %v402_v60  ;;  %405 = vst [vmem:[%s2234_s21 + $0x1e8] sm:$0xff] %v404_v61  ;;  %v408_v63 = vld [vmem:[%s2229_s20 + $0x3e8] sm:$0xff] }
  0x34   : > { %407 = vst [vmem:[%s2234_s21 + $0x1f0] sm:$0xff] %v406_v62  ;;  %409 = vst [vmem:[%s2234_s21 + $0x1f8] sm:$0xff] %v408_v63 }
  0x35 PF: > { %415 = sbr.rel (!%p2213_p4) target bundleno = 60 (0x3c), region = 59  ;;  %s417_s22 = sand.u32 (%p2213_p4), 1, %s2130_s28  }
  0x36   : > { %s2067_s23 = sshll.u32 (%p2213_p4), %s2134_s29, 4  ;;  %s2037_s24 = sshll.u32 (%p2213_p4), %s417_s22, 5 }
  0x37   : > { %s422_s10 = scalar_lea.vmem (%p2213_p4), %s3195_s5, %s2067_s23  ;;  %s419_s11 = scalar_lea.vmem (%p2213_p4), [#allocation3], %s2037_s24 }
  0x38   : > { %v435_v0 = vld [vmem:[%s422_s10] sm:$0xff] (%p2213_p4)  ;;  %v437_v1 = vld [vmem:[%s422_s10 + $0x8] sm:$0xff] (%p2213_p4) }
  0x39   : > { %v439_v2 = vld [vmem:[%s422_s10 + $0x20] sm:$0xff] (%p2213_p4)  ;;  %436 = vst [vmem:[%s419_s11] sm:$0xff] (%p2213_p4), %v435_v0  ;;  %438 = vst [vmem:[%s419_s11 + $0x8] sm:$0xff] (%p2213_p4), %v437_v1  ;;  %v441_v3 = vld [vmem:[%s422_s10 + $0x28] sm:$0xff] (%p2213_p4) }
  0x3a   : > { %440 = vst [vmem:[%s419_s11 + $0x10] sm:$0xff] (%p2213_p4), %v439_v2  ;;  %442 = vst [vmem:[%s419_s11 + $0x18] sm:$0xff] (%p2213_p4), %v441_v3 }
  0x3c PF: > { %p2040_p7 = scmp.ge.s32.totalorder %s2134_s29, 1  ;;  %p447_p8 = scmp.lt.s32.totalorder %s2134_s29, 3 }
  0x3e   : > { %p448_p9 = pnand %p2040_p7, %p447_p8 }
  0x40   : > { %451 = sbr.rel (%p448_p9) target bundleno = 729 (0x2d9), region = 82 }
  0x47   : > { %v1033_v4 = vld [vmem:[%s3193_s3] sm:$0xff]  ;;  %v3199_v6 = vmov 0   ;;  %v1034_v7 = vld [vmem:[%s3193_s3 + $0x8] sm:$0xff]  ;;  %v716_v9 = vld [vmem:[%s3192_s2 + $0x18] sm:$0xff]  ;;  %s454_s25 = sand.u32 1, %s2126_s27   ;;  %vm1735_vm0 = vcmask 130048  }
  0x48   : > { %v713_v5 = vld [vmem:[%s3192_s2] sm:$0xff]  ;;  %2101 = vset.pattern.permute.xlu1 %v3199_v6  ;;  %2100 = vset.pattern.permute.xlu0 %v3199_v6  ;;  %v714_v8 = vld [vmem:[%s3192_s2 + $0x8] sm:$0xff]  ;;  %v715_v10 = vld [vmem:[%s3192_s2 + $0x10] sm:$0xff]  ;;  %s2041_s26 = sshll.u32 %s454_s25, 9  ;;  %s2780_s20 = sshll.u32 %s454_s25, 5  ;;  %vm1699_vm1 = vcmask 7168  }
  0x49   : > { %1067 = vperm.xlu1 %2101, %v1033_v4   ;;  %747 = vperm.xlu0 %2100, %v713_v5   ;;  %v1036_v11 = vld [vmem:[%s3193_s3 + $0x18] sm:$0xff]  ;;  %v1035_v12 = vld [vmem:[%s3193_s3 + $0x10] sm:$0xff]  ;;  %v718_v13 = vld [vmem:[%s3192_s2 + $0x28] sm:$0xff]  ;;  %s2549_s29 = scalar_lea.vmem [#allocation2], %s2041_s26  ;;  %s2791_s27 = scalar_lea.vmem [#allocation3], %s2780_s20 }
  0x4a   : > { %v717_v14 = vld [vmem:[%s3192_s2 + $0x20] sm:$0xff]  ;;  %v1038_v15 = vld [vmem:[%s3193_s3 + $0x28] sm:$0xff]  ;;  %v720_v17 = vld [vmem:[%s3192_s2 + $0x38] sm:$0xff]  ;;  %s3148_s23 = scalar_lea.vmem [#allocation4], %s2780_s20  ;;  %p510_p10 = scmp.lt.s32.totalorder %s2198_s30, 1 }
  0x4b   : > { %v1037_v16 = vld [vmem:[%s3193_s3 + $0x20] sm:$0xff]  ;;  %v719_v18 = vld [vmem:[%s3192_s2 + $0x30] sm:$0xff]  ;;  %v1040_v19 = vld [vmem:[%s3193_s3 + $0x38] sm:$0xff]  ;;  %s2074_s18 = sshll.u32 (%p2217_p5), %s2198_s30, 4 }
  0x4c   : > { %v1039_v20 = vld [vmem:[%s3193_s3 + $0x30] sm:$0xff]  ;;  %v722_v21 = vld [vmem:[%s3192_s2 + $0x48] sm:$0xff]  ;;  %v721_v22 = vld [vmem:[%s3192_s2 + $0x40] sm:$0xff]  ;;  %s511_s24 = scalar_select %p510_p10, %s2198_s30, 1 }
  0x4d   : > { %1072 = vperm.xlu1 %2101, %v1034_v7   ;;  %752 = vperm.xlu0 %2100, %v714_v8   ;;  %v1042_v23 = vld [vmem:[%s3193_s3 + $0x48] sm:$0xff]  ;;  %v1041_v24 = vld [vmem:[%s3193_s3 + $0x40] sm:$0xff]  ;;  %v724_v25 = vld [vmem:[%s3192_s2 + $0x58] sm:$0xff] }
  0x4e   : > { %v723_v26 = vld [vmem:[%s3192_s2 + $0x50] sm:$0xff]  ;;  %v1044_v27 = vld [vmem:[%s3193_s3 + $0x58] sm:$0xff]  ;;  %v726_v29 = vld [vmem:[%s3192_s2 + $0x68] sm:$0xff]  ;;  %s2068_s26 = sshll.u32 %s511_s24, 5 }
  0x4f   : > { %v1043_v28 = vld [vmem:[%s3193_s3 + $0x50] sm:$0xff]  ;;  %v725_v30 = vld [vmem:[%s3192_s2 + $0x60] sm:$0xff]  ;;  %v1046_v31 = vld [vmem:[%s3193_s3 + $0x68] sm:$0xff]  ;;  %s514_s13 = scalar_lea.vmem %s3197_s7, %s2068_s26  ;;  %s519_s17 = scalar_lea.vmem %s3198_s8, %s2068_s26 }
  0x50   : > { %v1045_v32 = vld [vmem:[%s3193_s3 + $0x60] sm:$0xff]  ;;  %v728_v33 = vld [vmem:[%s3192_s2 + $0x78] sm:$0xff]  ;;  %v727_v34 = vld [vmem:[%s3192_s2 + $0x70] sm:$0xff] }
  0x51   : > { %762 = vperm.xlu1 %2101, %v716_v9   ;;  %757 = vperm.xlu0 %2100, %v715_v10   ;;  %v1048_v35 = vld [vmem:[%s3193_s3 + $0x78] sm:$0xff]  ;;  %v1047_v36 = vld [vmem:[%s3193_s3 + $0x70] sm:$0xff]  ;;  %v730_v37 = vld [vmem:[%s3192_s2 + $0x88] sm:$0xff] }
  0x52   : > { %v729_v38 = vld [vmem:[%s3192_s2 + $0x80] sm:$0xff]  ;;  %v1050_v39 = vld [vmem:[%s3193_s3 + $0x88] sm:$0xff]  ;;  %v732_v41 = vld [vmem:[%s3192_s2 + $0x98] sm:$0xff] }
  0x53   : > { %v1049_v40 = vld [vmem:[%s3193_s3 + $0x80] sm:$0xff]  ;;  %v731_v42 = vld [vmem:[%s3192_s2 + $0x90] sm:$0xff]  ;;  %v1052_v43 = vld [vmem:[%s3193_s3 + $0x98] sm:$0xff] }
  0x54   : > { %v1051_v44 = vld [vmem:[%s3193_s3 + $0x90] sm:$0xff]  ;;  %v734_v45 = vld [vmem:[%s3192_s2 + $0xa8] sm:$0xff]  ;;  %v733_v46 = vld [vmem:[%s3192_s2 + $0xa0] sm:$0xff] }
  0x55   : > { %1082 = vperm.xlu1 %2101, %v1036_v11   ;;  %1077 = vperm.xlu0 %2100, %v1035_v12   ;;  %v1054_v47 = vld [vmem:[%s3193_s3 + $0xa8] sm:$0xff]  ;;  %v1053_v48 = vld [vmem:[%s3193_s3 + $0xa0] sm:$0xff]  ;;  %v736_v49 = vld [vmem:[%s3192_s2 + $0xb8] sm:$0xff] }
  0x56   : > { %v735_v50 = vld [vmem:[%s3192_s2 + $0xb0] sm:$0xff]  ;;  %v1056_v51 = vld [vmem:[%s3193_s3 + $0xb8] sm:$0xff]  ;;  %v738_v53 = vld [vmem:[%s3192_s2 + $0xc8] sm:$0xff] }
  0x57   : > { %v1055_v52 = vld [vmem:[%s3193_s3 + $0xb0] sm:$0xff]  ;;  %v737_v54 = vld [vmem:[%s3192_s2 + $0xc0] sm:$0xff]  ;;  %v1058_v55 = vld [vmem:[%s3193_s3 + $0xc8] sm:$0xff] }
  0x58   : > { %v1057_v56 = vld [vmem:[%s3193_s3 + $0xc0] sm:$0xff]  ;;  %v740_v57 = vld [vmem:[%s3192_s2 + $0xd8] sm:$0xff]  ;;  %v739_v58 = vld [vmem:[%s3192_s2 + $0xd0] sm:$0xff] }
  0x59   : > { %772 = vperm.xlu1 %2101, %v718_v13   ;;  %767 = vperm.xlu0 %2100, %v717_v14   ;;  %v1060_v59 = vld [vmem:[%s3193_s3 + $0xd8] sm:$0xff]  ;;  %v1059_v60 = vld [vmem:[%s3193_s3 + $0xd0] sm:$0xff]  ;;  %v742_v61 = vld [vmem:[%s3192_s2 + $0xe8] sm:$0xff] }
  0x5a   : > { %v741_v62 = vld [vmem:[%s3192_s2 + $0xe0] sm:$0xff]  ;;  %v2555_v0 = vld [vmem:[%s2549_s29 + $0x8] sm:$0xff]  ;;  %v2558_v1 = vld [vmem:[%s2549_s29 + $0x10] sm:$0xff] }
  0x5b   : > { %v2552_v63 = vld [vmem:[%s2549_s29] sm:$0xff]  ;;  %v2561_v2 = vld [vmem:[%s2549_s29 + $0x18] sm:$0xff]  ;;  %v2564_v3 = vld [vmem:[%s2549_s29 + $0x30] sm:$0xff]  ;;  %v587_v10 = vunpack.c.l.bf16 %v2555_v0  ;;  %v588_v13 = vunpack.c.h.bf16 %v2555_v0  ;;  %v589_v14 = vunpack.c.l.bf16 %v2558_v1 }
  0x5c   : > { %v2567_v4 = vld [vmem:[%s2549_s29 + $0x38] sm:$0xff]  ;;  %v2570_v5 = vld [vmem:[%s2549_s29 + $0x20] sm:$0xff]  ;;  %v1062_v7 = vld [vmem:[%s3193_s3 + $0xe8] sm:$0xff]  ;;  %v585_v9 = vunpack.c.l.bf16 %v2552_v63  ;;  %v586_v12 = vunpack.c.h.bf16 %v2552_v63 }
  0x5d   : > { %1092 = vperm.xlu1 %2101, %v1038_v15   ;;  %1087 = vperm.xlu0 %2100, %v1037_v16   ;;  %v1061_v8 = vld [vmem:[%s3193_s3 + $0xe0] sm:$0xff]  ;;  %v2581_v11 = vld [vmem:[%s2549_s29 + $0x28] sm:$0xff]  ;;  %v591_v15 = vunpack.c.l.bf16 %v2561_v2  ;;  %v597_v16 = vunpack.c.l.bf16 %v2564_v3 }
  0x5e   : > { %v2695_v6 = vld [vmem:[%s2549_s29 + $0xc8] sm:$0xff] }
  0x61   : > { %782 = vperm.xlu1 %2101, %v720_v17   ;;  %777 = vperm.xlu0 %2100, %v719_v18   ;;  %v598_v17 = vunpack.c.h.bf16 %v2564_v3  ;;  %v2590_v18 = vld [vmem:[%s2549_s29 + $0x50] sm:$0xff] }
  0x65   : > { %1102 = vperm.xlu1 %2101, %v1040_v19   ;;  %1097 = vperm.xlu0 %2100, %v1039_v20   ;;  %v2593_v19 = vld [vmem:[%s2549_s29 + $0x58] sm:$0xff]  ;;  %v599_v20 = vunpack.c.l.bf16 %v2567_v4 }
  0x69   : > { %792 = vperm.xlu1 %2101, %v722_v21   ;;  %787 = vperm.xlu0 %2100, %v721_v22   ;;  %v600_v21 = vunpack.c.h.bf16 %v2567_v4  ;;  %v593_v22 = vunpack.c.l.bf16 %v2570_v5  ;;  %v3212_v4 = vunpack.c.h.bf16 %v2581_v11 }
  0x6d   : > { %1112 = vperm.xlu1 %2101, %v1042_v23   ;;  %1107 = vperm.xlu0 %2100, %v1041_v24   ;;  %v594_v23 = vunpack.c.h.bf16 %v2570_v5  ;;  %v2600_v24 = vld [vmem:[%s2549_s29 + $0x40] sm:$0xff] }
  0x71   : > { %802 = vperm.xlu1 %2101, %v724_v25   ;;  %797 = vperm.xlu0 %2100, %v723_v26   ;;  %v2603_v25 = vld [vmem:[%s2549_s29 + $0x48] sm:$0xff]  ;;  %v744_v26 = vld [vmem:[%s3192_s2 + $0xf8] sm:$0xff] }
  0x75   : > { %1122 = vperm.xlu1 %2101, %v1044_v27   ;;  %1117 = vperm.xlu0 %2100, %v1043_v28   ;;  %v595_v27 = vunpack.c.l.bf16 %v2581_v11 }
  0x79   : > { %812 = vperm.xlu1 %2101, %v726_v29   ;;  %807 = vperm.xlu0 %2100, %v725_v30   ;;  %v590_v29 = vunpack.c.h.bf16 %v2558_v1  ;;  %v592_v30 = vunpack.c.h.bf16 %v2561_v2  ;;  %v2104_v1 = vld [vmem:[%s3190_s0 + $0x4] ss:$8 sps:$4 sm:$0xff]  }
  0x7a   : > { %1589 = vmatprep.mubr.bf16.mxu0 %v2104_v1  ;;  %1632 = vmatprep.mubr.bf16.mxu1 %v2104_v1 }
  0x7d   : > { %1132 = vperm.xlu1 %2101, %v1046_v31   ;;  %1127 = vperm.xlu0 %2100, %v1045_v32   ;;  %v2613_v31 = vld [vmem:[%s2549_s29 + $0x70] sm:$0xff]  ;;  %v2616_v32 = vld [vmem:[%s2549_s29 + $0x78] sm:$0xff] }
  0x81   : > { %822 = vperm.xlu1 %2101, %v728_v33   ;;  %817 = vperm.xlu0 %2100, %v727_v34   ;;  %v743_v33 = vld [vmem:[%s3192_s2 + $0xf0] sm:$0xff] }
  0x85   : > { %1142 = vperm.xlu1 %2101, %v1048_v35   ;;  %1137 = vperm.xlu0 %2100, %v1047_v36   ;;  %v2755_v35 = vld [vmem:[%s2549_s29 + $0x130] sm:$0xff] }
  0x86   : > { %3210 = vst [vmem:[#allocation6_spill] sm:$0xff] %v2755_v35 }
  0x89   : > { %832 = vperm.xlu1 %2101, %v730_v37   ;;  %827 = vperm.xlu0 %2100, %v729_v38   ;;  %v2626_v38 = vld [vmem:[%s2549_s29 + $0x60] sm:$0xff] }
  0x8d   : > { %1152 = vperm.xlu1 %2101, %v1050_v39   ;;  %1147 = vperm.xlu0 %2100, %v1049_v40   ;;  %v2629_v39 = vld [vmem:[%s2549_s29 + $0x68] sm:$0xff] }
  0x91   : > { %842 = vperm.xlu1 %2101, %v732_v41   ;;  %837 = vperm.xlu0 %2100, %v731_v42  }
  0x95   : > { %1162 = vperm.xlu1 %2101, %v1052_v43   ;;  %1157 = vperm.xlu0 %2100, %v1051_v44   ;;  %v2636_v44 = vld [vmem:[%s2549_s29 + $0x90] sm:$0xff] }
  0x99   : > { %852 = vperm.xlu1 %2101, %v734_v45   ;;  %847 = vperm.xlu0 %2100, %v733_v46   ;;  %v2639_v45 = vld [vmem:[%s2549_s29 + $0x98] sm:$0xff] }
  0x9d   : > { %1172 = vperm.xlu1 %2101, %v1054_v47   ;;  %1167 = vperm.xlu0 %2100, %v1053_v48   ;;  %v2716_v47 = vld [vmem:[%s2549_s29 + $0xe0] sm:$0xff] }
  0xa1   : > { %862 = vperm.xlu1 %2101, %v736_v49   ;;  %857 = vperm.xlu0 %2100, %v735_v50   ;;  %v2646_v50 = vld [vmem:[%s2549_s29 + $0x80] sm:$0xff]  ;;  %v2702_v49 = vld [vmem:[%s2549_s29 + $0xf0] sm:$0xff] }
  0xa5   : > { %1182 = vperm.xlu1 %2101, %v1056_v51   ;;  %1177 = vperm.xlu0 %2100, %v1055_v52   ;;  %v2649_v51 = vld [vmem:[%s2549_s29 + $0x88] sm:$0xff]  ;;  %v1064_v52 = vld [vmem:[%s3193_s3 + $0xf8] sm:$0xff] }
  0xa9   : > { %872 = vperm.xlu1 %2101, %v738_v53   ;;  %867 = vperm.xlu0 %2100, %v737_v54   ;;  %v2692_v53 = vld [vmem:[%s2549_s29 + $0xc0] sm:$0xff]  ;;  %v2705_v54 = vld [vmem:[%s2549_s29 + $0xf8] sm:$0xff] }
  0xad   : > { %1192 = vperm.xlu1 %2101, %v1058_v55   ;;  %1187 = vperm.xlu0 %2100, %v1057_v56   ;;  %v2685_v55 = vld [vmem:[%s2549_s29 + $0xd8] sm:$0xff] }
  0xb1   : > { %882 = vperm.xlu1 %2101, %v740_v57   ;;  %877 = vperm.xlu0 %2100, %v739_v58   ;;  %v2659_v57 = vld [vmem:[%s2549_s29 + $0xb0] sm:$0xff]  ;;  %v2662_v58 = vld [vmem:[%s2549_s29 + $0xb8] sm:$0xff] }
  0xb5   : > { %1202 = vperm.xlu1 %2101, %v1060_v59   ;;  %1197 = vperm.xlu0 %2100, %v1059_v60   ;;  %v1063_v59 = vld [vmem:[%s3193_s3 + $0xf0] sm:$0xff]  ;;  %v2740_v60 = vld [vmem:[%s2549_s29 + $0x100] sm:$0xff] }
  0xb9   : > { %892 = vperm.xlu1 %2101, %v742_v61   ;;  %887 = vperm.xlu0 %2100, %v741_v62   ;;  %v2682_v61 = vld [vmem:[%s2549_s29 + $0xd0] sm:$0xff]  ;;  %v2729_v62 = vld [vmem:[%s2549_s29 + $0x118] sm:$0xff] }
  0xbd   : > { %1212 = vperm.xlu1 %2101, %v1062_v7   ;;  %1207 = vperm.xlu0 %2100, %v1061_v8   ;;  %v2672_v8 = vld [vmem:[%s2549_s29 + $0xa0] sm:$0xff]  ;;  %v2726_v7 = vld [vmem:[%s2549_s29 + $0x110] sm:$0xff] }
  0xc1   : > { %902 = vperm.xlu1 %2101, %v744_v26   ;;  %897 = vperm.xlu0 %2100, %v743_v33   ;;  %v2675_v26 = vld [vmem:[%s2549_s29 + $0xa8] sm:$0xff] }
  0xc2   : > { %v2719_v33 = vld [vmem:[%s2549_s29 + $0xe8] sm:$0xff] }
  0xc5   : > { %1222 = vperm.xlu1 %2101, %v1064_v52   ;;  %1217 = vperm.xlu0 %2100, %v1063_v59  }
  0xc8   : > { %v1068_v46 = vpop.permute.xlu1 %1067  ;;  %v748_v52 = vpop.permute.xlu0 %747 }
  0xc9   : > { %v905_v48 = vmul.f32 %v748_v52, %v585_v9  ;;  %v907_v42 = vmul.f32 %v748_v52, %v587_v10  ;;  %v906_v43 = vmul.f32 %v748_v52, %v586_v12  ;;  %v908_v59 = vmul.f32 %v748_v52, %v588_v13  ;;  %v2751_v12 = vld [vmem:[%s2549_s29 + $0x108] sm:$0xff]  ;;  %v2764_v9 = vld [vmem:[%s2549_s29 + $0x138] sm:$0xff] }
  0xca   : > { %3209 = vst [vmem:[#allocation5_spill] sm:$0xff] %v2751_v12  ;;  %3211 = vst [vmem:[#allocation7_spill] sm:$0xff] %v2764_v9 }
  0xcb   : > { %v1226_v56 = vadd.f32 %v1068_v46, %v906_v43  ;;  %v1228_v36 = vadd.f32 %v1068_v46, %v908_v59  ;;  %v1225_v41 = vadd.f32 %v1068_v46, %v905_v48  ;;  %v1227_v10 = vadd.f32 %v1068_v46, %v907_v42 }
  0xcc   : > { %v1073_v13 = vpop.permute.xlu1 %1072  ;;  %v753_v52 = vpop.permute.xlu0 %752 }
  0xcd   : > { %v909_v37 = vmul.f32 %v753_v52, %v589_v14  ;;  %v911_v63 = vmul.f32 %v753_v52, %v591_v15  ;;  %v910_v0 = vmul.f32 %v753_v52, %v590_v29  ;;  %v912_v43 = vmul.f32 %v753_v52, %v592_v30 }
  0xce   : > { %v1354_v40 = vmax.f32 %v1226_v56, 0.0  ;;  %v1353_v59 = vmax.f32 %v1225_v41, 0.0 }
  0xcf   : > { %v1230_v34 = vadd.f32 %v1073_v13, %v910_v0  ;;  %v1229_v14 = vadd.f32 %v1073_v13, %v909_v37  ;;  %v1231_v28 = vadd.f32 %v1073_v13, %v911_v63  ;;  %v1232_v2 = vadd.f32 %v1073_v13, %v912_v43 }
  0xd0   : > { %v763_v29 = vpop.permute.xlu1 %762  ;;  %v758_v42 = vpop.permute.xlu0 %757  ;;  %v1356_v0 = vmax.f32 %v1228_v36, 0.0  ;;  %v1355_v37 = vmax.f32 %v1227_v10, 0.0 }
  0xd1   : > { %v917_v63 = vmul.f32 %v763_v29, %v597_v16  ;;  %v918_v13 = vmul.f32 %v763_v29, %v598_v17  ;;  %v919_v43 = vmul.f32 %v763_v29, %v599_v20  ;;  %v920_v56 = vmul.f32 %v763_v29, %v600_v21 }
  0xd2   : > { %v1358_v36 = vmax.f32 %v1230_v34, 0.0  ;;  %v1360_v41 = vmax.f32 %v1232_v2, 0.0  ;;  %v1357_v10 = vmax.f32 %v1229_v14, 0.0  ;;  %v1359_v52 = vmax.f32 %v1231_v28, 0.0 }
  0xd3   : > { %v913_v16 = vmul.f32 %v758_v42, %v593_v22  ;;  %v914_v3 = vmul.f32 %v758_v42, %v594_v23  ;;  %v915_v17 = vmul.f32 %v758_v42, %v595_v27  ;;  %v916_v20 = vmul.f32 %v758_v42, %v3212_v4  ;;  %v2802_v22 = vld [vmem:[%s2549_s29 + $0x120] sm:$0xff] }
  0xd4   : > { %v1083_v21 = vpop.permute.xlu1 %1082  ;;  %v1078_v34 = vpop.permute.xlu0 %1077  ;;  %v1484_v5 = vpack.c.bf16 %v1358_v36, %v1354_v40  ;;  %v1486_v23 = vpack.c.bf16 %v1360_v41, %v1356_v0  ;;  %v1483_v48 = vpack.c.bf16 %v1357_v10, %v1353_v59  ;;  %v1485_v9 = vpack.c.bf16 %v1359_v52, %v1355_v37 }
  0xd5   : > { %v1237_v1 = vadd.f32 %v1083_v21, %v917_v63  ;;  %v1238_v14 = vadd.f32 %v1083_v21, %v918_v13  ;;  %v1239_v28 = vadd.f32 %v1083_v21, %v919_v43  ;;  %v1240_v29 = vadd.f32 %v1083_v21, %v920_v56 }
  0xd6   : > { %v1233_v2 = vadd.f32 %v1078_v34, %v913_v16  ;;  %v1234_v46 = vadd.f32 %v1078_v34, %v914_v3  ;;  %v1235_v30 = vadd.f32 %v1078_v34, %v915_v17  ;;  %v1236_v15 = vadd.f32 %v1078_v34, %v916_v20  ;;  %1557 = vmatprep.subr.bf16.mxu0 %v1484_v5  ;;  %v2822_v5 = vld [vmem:[%s2549_s29 + $0x128] sm:$0xff] }
  0xd7   : > { %v1366_v42 = vmax.f32 %v1238_v14, 0.0  ;;  %v1368_v12 = vmax.f32 %v1240_v29, 0.0  ;;  %1600 = vmatprep.subr.bf16.mxu1 %v1486_v23  ;;  %v3213_v63 = vunpack.c.l.bf16 %v2590_v18  ;;  %v3214_v43 = vunpack.c.h.bf16 %v2590_v18  ;;  %1558 = vmatpush1.bf16.msra.mxu0 %v1483_v48 }
  0xd8   : > { %v773_v27 = vpop.permute.xlu1 %772  ;;  %v768_v35 = vpop.permute.xlu0 %767  ;;  %v1362_v11 = vmax.f32 %v1234_v46, 0.0  ;;  %v1364_v4 = vmax.f32 %v1236_v15, 0.0  ;;  %v1361_v16 = vmax.f32 %v1233_v2, 0.0  ;;  %v657_v40 = vunpack.c.l.bf16 %v2802_v22  ;;  %1601 = vmatpush1.bf16.msra.mxu1 %v1485_v9 }
  0xd9   : > { %v925_v13 = vmul.f32 %v773_v27, %v3213_v63  ;;  %v926_v56 = vmul.f32 %v773_v27, %v3214_v43  ;;  %v3215_v59 = vunpack.c.l.bf16 %v2593_v19  ;;  %v3216_v46 = vunpack.c.h.bf16 %v2593_v19 }
  0xda   : > { %v3217_v0 = vunpack.c.l.bf16 %v2600_v24  ;;  %v1365_v36 = vmax.f32 %v1237_v1, 0.0  ;;  %v3218_v41 = vunpack.c.h.bf16 %v2600_v24  ;;  %v3219_v10 = vunpack.c.l.bf16 %v2603_v25 }
  0xdb   : > { %v927_v52 = vmul.f32 %v773_v27, %v3215_v59  ;;  %v928_v15 = vmul.f32 %v773_v27, %v3216_v46  ;;  %v1488_v17 = vpack.c.bf16 %v1366_v42, %v1362_v11  ;;  %v1490_v48 = vpack.c.bf16 %v1368_v12, %v1364_v4 }
  0xdc   : > { %v921_v37 = vmul.f32 %v768_v35, %v3217_v0  ;;  %v922_v18 = vmul.f32 %v768_v35, %v3218_v41  ;;  %v923_v3 = vmul.f32 %v768_v35, %v3219_v10  ;;  %v3220_v9 = vunpack.c.h.bf16 %v2603_v25  ;;  %v1093_v21 = vpop.permute.xlu1 %1092  ;;  %v1088_v34 = vpop.permute.xlu0 %1087 }
  0xdd   : > { %v1487_v19 = vpack.c.bf16 %v1365_v36, %v1361_v16  ;;  %v1363_v14 = vmax.f32 %v1235_v30, 0.0  ;;  %v1367_v29 = vmax.f32 %v1239_v28, 0.0  ;;  %1559 = vmatprep.subr.bf16.mxu0 %v1488_v17  ;;  %1602 = vmatprep.subr.bf16.mxu1 %v1490_v48  ;;  %v1245_v1 = vadd.f32 %v1093_v21, %v925_v13 }
  0xde   : > { %v924_v20 = vmul.f32 %v768_v35, %v3220_v9  ;;  %v1246_v24 = vadd.f32 %v1093_v21, %v926_v56  ;;  %v1247_v2 = vadd.f32 %v1093_v21, %v927_v52  ;;  %v658_v23 = vunpack.c.h.bf16 %v2802_v22  ;;  %v2826_v35 = vld [vmem:[%s2549_s29 + $0x150] sm:$0xff] }
  0xdf   : > { %v1248_v27 = vadd.f32 %v1093_v21, %v928_v15  ;;  %v1241_v12 = vadd.f32 %v1088_v34, %v921_v37  ;;  %v1242_v11 = vadd.f32 %v1088_v34, %v922_v18  ;;  %v1243_v25 = vadd.f32 %v1088_v34, %v923_v3  ;;  %1560 = vmatpush1.bf16.msra.mxu0 %v1487_v19 }
  0xe0   : > { %v1244_v42 = vadd.f32 %v1088_v34, %v924_v20  ;;  %v1489_v4 = vpack.c.bf16 %v1367_v29, %v1363_v14  ;;  %v1374_v30 = vmax.f32 %v1246_v24, 0.0  ;;  %v1373_v28 = vmax.f32 %v1245_v1, 0.0  ;;  %v783_v63 = vpop.permute.xlu1 %782  ;;  %v778_v43 = vpop.permute.xlu0 %777 }
  0xe1   : > { %v1370_v13 = vmax.f32 %v1242_v11, 0.0  ;;  %v1369_v56 = vmax.f32 %v1241_v12, 0.0  ;;  %v659_v16 = vunpack.c.l.bf16 %v2822_v5  ;;  %v660_v59 = vunpack.c.h.bf16 %v2822_v5 }
  0xe2   : > { %1603 = vmatpush1.bf16.msra.mxu1 %v1489_v4  ;;  %v1376_v52 = vmax.f32 %v1248_v27, 0.0  ;;  %v1371_v46 = vmax.f32 %v1243_v25, 0.0  ;;  %v669_v15 = vunpack.c.l.bf16 %v2826_v35  ;;  %v670_v0 = vunpack.c.h.bf16 %v2826_v35 }
  0xe3   : > { %v3221_v37 = vunpack.c.l.bf16 %v2613_v31  ;;  %v3222_v41 = vunpack.c.h.bf16 %v2613_v31  ;;  %v3223_v10 = vunpack.c.l.bf16 %v2616_v32  ;;  %v3224_v17 = vunpack.c.h.bf16 %v2616_v32 }
  0xe4   : > { %v1492_v9 = vpack.c.bf16 %v1374_v30, %v1370_v13  ;;  %v1372_v20 = vmax.f32 %v1244_v42, 0.0  ;;  %v1491_v21 = vpack.c.bf16 %v1373_v28, %v1369_v56  ;;  %v1375_v34 = vmax.f32 %v1247_v2, 0.0  ;;  %v1103_v32 = vpop.permute.xlu1 %1102  ;;  %v1098_v11 = vpop.permute.xlu0 %1097  ;;  %v2849_v30 = vld [vmem:[%s2549_s29 + $0x158] sm:$0xff]  ;;  %v2852_v56 = vld [vmem:[%s2549_s29 + $0x140] sm:$0xff] }
  0xe5   : > { %v933_v36 = vmul.f32 %v783_v63, %v3221_v37  ;;  %v934_v18 = vmul.f32 %v783_v63, %v3222_v41  ;;  %v935_v3 = vmul.f32 %v783_v63, %v3223_v10  ;;  %v936_v48 = vmul.f32 %v783_v63, %v3224_v17 }
  0xe6   : > { %v3225_v19 = vunpack.c.l.bf16 %v2626_v38  ;;  %v3226_v29 = vunpack.c.h.bf16 %v2626_v38  ;;  %v3227_v31 = vunpack.c.l.bf16 %v2629_v39  ;;  %v3228_v27 = vunpack.c.h.bf16 %v2629_v39  ;;  %1561 = vmatprep.subr.bf16.mxu0 %v1492_v9 }
  0xe7   : > { %v1494_v25 = vpack.c.bf16 %v1376_v52, %v1372_v20  ;;  %v1253_v42 = vadd.f32 %v1103_v32, %v933_v36  ;;  %v1254_v4 = vadd.f32 %v1103_v32, %v934_v18  ;;  %v1255_v2 = vadd.f32 %v1103_v32, %v935_v3  ;;  %1562 = vmatpush1.bf16.msra.mxu0 %v1491_v21 }
  0xe8   : > { %v929_v14 = vmul.f32 %v778_v43, %v3225_v19  ;;  %v930_v1 = vmul.f32 %v778_v43, %v3226_v29  ;;  %v931_v24 = vmul.f32 %v778_v43, %v3227_v31  ;;  %v932_v12 = vmul.f32 %v778_v43, %v3228_v27  ;;  %v793_v10 = vpop.permute.xlu1 %792  ;;  %v788_v17 = vpop.permute.xlu0 %787 }
  0xe9   : > { %v1256_v28 = vadd.f32 %v1103_v32, %v936_v48  ;;  %1604 = vmatprep.subr.bf16.mxu1 %v1494_v25  ;;  %v1493_v39 = vpack.c.bf16 %v1375_v34, %v1371_v46  ;;  %v1382_v43 = vmax.f32 %v1254_v4, 0.0  ;;  %v1381_v41 = vmax.f32 %v1253_v42, 0.0 }
  0xea   : > { %v1249_v63 = vadd.f32 %v1098_v11, %v929_v14  ;;  %v1250_v38 = vadd.f32 %v1098_v11, %v930_v1  ;;  %v1251_v13 = vadd.f32 %v1098_v11, %v931_v24  ;;  %v1252_v37 = vadd.f32 %v1098_v11, %v932_v12 }
  0xeb   : > { %v671_v18 = vunpack.c.l.bf16 %v2849_v30  ;;  %v672_v3 = vunpack.c.h.bf16 %v2849_v30  ;;  %1605 = vmatpush1.bf16.msra.mxu1 %v1493_v39  ;;  %v1384_v48 = vmax.f32 %v1256_v28, 0.0  ;;  %v665_v20 = vunpack.c.l.bf16 %v2852_v56 }
  0xec   : > { %v1378_v52 = vmax.f32 %v1250_v38, 0.0  ;;  %v1377_v36 = vmax.f32 %v1249_v63, 0.0  ;;  %v1379_v9 = vmax.f32 %v1251_v13, 0.0  ;;  %v666_v21 = vunpack.c.h.bf16 %v2852_v56  ;;  %v1108_v39 = vpop.permute.xlu0 %1107 }
  0xed   : > { %v3229_v19 = vunpack.c.l.bf16 %v2636_v44  ;;  %v3230_v34 = vunpack.c.h.bf16 %v2636_v44  ;;  %v3231_v29 = vunpack.c.l.bf16 %v2639_v45  ;;  %v3232_v31 = vunpack.c.h.bf16 %v2639_v45  ;;  %v1113_v45 = vpop.permute.xlu1 %1112 }
  0xee   : > { %v1496_v27 = vpack.c.bf16 %v1382_v43, %v1378_v52  ;;  %v1380_v12 = vmax.f32 %v1252_v37, 0.0  ;;  %v1495_v32 = vpack.c.bf16 %v1381_v41, %v1377_v36  ;;  %v1383_v11 = vmax.f32 %v1255_v2, 0.0 }
  0xef   : > { %v941_v46 = vmul.f32 %v793_v10, %v3229_v19  ;;  %v942_v14 = vmul.f32 %v793_v10, %v3230_v34  ;;  %v943_v1 = vmul.f32 %v793_v10, %v3231_v29  ;;  %v944_v24 = vmul.f32 %v793_v10, %v3232_v31  ;;  %v2875_v10 = vld [vmem:[%s2549_s29 + $0x148] sm:$0xff]  ;;  %v2878_v34 = vld [vmem:[%s2549_s29 + $0x170] sm:$0xff] }
  0xf0   : > { %v3233_v25 = vunpack.c.l.bf16 %v2646_v50  ;;  %v3234_v4 = vunpack.c.h.bf16 %v2646_v50  ;;  %v3235_v44 = vunpack.c.l.bf16 %v2649_v51  ;;  %v3236_v38 = vunpack.c.h.bf16 %v2649_v51  ;;  %1563 = vmatprep.subr.bf16.mxu0 %v1496_v27  ;;  %v798_v27 = vpop.permute.xlu0 %797 }
  0xf1   : > { %v1498_v43 = vpack.c.bf16 %v1384_v48, %v1380_v12  ;;  %v1261_v37 = vadd.f32 %v1113_v45, %v941_v46  ;;  %v1262_v41 = vadd.f32 %v1113_v45, %v942_v14  ;;  %v1263_v2 = vadd.f32 %v1113_v45, %v943_v1  ;;  %1564 = vmatpush1.bf16.msra.mxu0 %v1495_v32 }
  0xf2   : > { %v937_v42 = vmul.f32 %v788_v17, %v3233_v25  ;;  %v938_v28 = vmul.f32 %v788_v17, %v3234_v4  ;;  %v939_v63 = vmul.f32 %v788_v17, %v3235_v44  ;;  %v940_v13 = vmul.f32 %v788_v17, %v3236_v38  ;;  %v803_v25 = vpop.permute.xlu1 %802 }
  0xf3   : > { %v1264_v52 = vadd.f32 %v1113_v45, %v944_v24  ;;  %1606 = vmatprep.subr.bf16.mxu1 %v1498_v43  ;;  %v1497_v51 = vpack.c.bf16 %v1383_v11, %v1379_v9  ;;  %v1390_v17 = vmax.f32 %v1262_v41, 0.0  ;;  %v1389_v31 = vmax.f32 %v1261_v37, 0.0 }
  0xf4   : > { %v1257_v36 = vadd.f32 %v1108_v39, %v937_v42  ;;  %v1258_v50 = vadd.f32 %v1108_v39, %v938_v28  ;;  %v1259_v19 = vadd.f32 %v1108_v39, %v939_v63  ;;  %v1260_v29 = vadd.f32 %v1108_v39, %v940_v13 }
  0xf5   : > { %v667_v14 = vunpack.c.l.bf16 %v2875_v10  ;;  %v668_v1 = vunpack.c.h.bf16 %v2875_v10  ;;  %1607 = vmatpush1.bf16.msra.mxu1 %v1497_v51  ;;  %v1392_v24 = vmax.f32 %v1264_v52, 0.0  ;;  %v677_v32 = vunpack.c.l.bf16 %v2878_v34 }
  0xf6   : > { %v1386_v48 = vmax.f32 %v1258_v50, 0.0  ;;  %v1385_v46 = vmax.f32 %v1257_v36, 0.0  ;;  %v1387_v12 = vmax.f32 %v1259_v19, 0.0  ;;  %v678_v42 = vunpack.c.h.bf16 %v2878_v34 }
  0xf7   : > { %v3237_v4 = vunpack.c.l.bf16 %v2659_v57  ;;  %v3238_v11 = vunpack.c.h.bf16 %v2659_v57  ;;  %v3239_v44 = vunpack.c.l.bf16 %v2662_v58  ;;  %v3240_v38 = vunpack.c.h.bf16 %v2662_v58  ;;  %v1123_v58 = vpop.permute.xlu1 %1122 }
  0xf8   : > { %v1500_v45 = vpack.c.bf16 %v1390_v17, %v1386_v48  ;;  %v1388_v39 = vmax.f32 %v1260_v29, 0.0  ;;  %v1499_v43 = vpack.c.bf16 %v1389_v31, %v1385_v46  ;;  %v1391_v37 = vmax.f32 %v1263_v2, 0.0  ;;  %v2901_v48 = vld [vmem:[%s2549_s29 + $0x178] sm:$0xff] }
  0xf9   : > { %v949_v9 = vmul.f32 %v803_v25, %v3237_v4  ;;  %v950_v28 = vmul.f32 %v803_v25, %v3238_v11  ;;  %v951_v63 = vmul.f32 %v803_v25, %v3239_v44  ;;  %v952_v13 = vmul.f32 %v803_v25, %v3240_v38  ;;  %v1118_v25 = vpop.permute.xlu0 %1117  ;;  %v2904_v38 = vld [vmem:[%s2549_s29 + $0x160] sm:$0xff] }
  0xfa   : > { %v3241_v41 = vunpack.c.l.bf16 %v2672_v8  ;;  %v3242_v36 = vunpack.c.h.bf16 %v2672_v8  ;;  %v3243_v57 = vunpack.c.l.bf16 %v2675_v26  ;;  %v3244_v51 = vunpack.c.h.bf16 %v2675_v26  ;;  %1565 = vmatprep.subr.bf16.mxu0 %v1500_v45 }
  0xfb   : > { %v1502_v17 = vpack.c.bf16 %v1392_v24, %v1388_v39  ;;  %v1269_v29 = vadd.f32 %v1123_v58, %v949_v9  ;;  %v1270_v31 = vadd.f32 %v1123_v58, %v950_v28  ;;  %v1271_v2 = vadd.f32 %v1123_v58, %v951_v63  ;;  %1566 = vmatpush1.bf16.msra.mxu0 %v1499_v43 }
  0xfc   : > { %v945_v52 = vmul.f32 %v798_v27, %v3241_v41  ;;  %v946_v50 = vmul.f32 %v798_v27, %v3242_v36  ;;  %v947_v19 = vmul.f32 %v798_v27, %v3243_v57  ;;  %v948_v4 = vmul.f32 %v798_v27, %v3244_v51  ;;  %v813_v57 = vpop.permute.xlu1 %812 }
  0xfd   : > { %v1272_v46 = vadd.f32 %v1123_v58, %v952_v13  ;;  %1608 = vmatprep.subr.bf16.mxu1 %v1502_v17  ;;  %v1501_v26 = vpack.c.bf16 %v1391_v37, %v1387_v12  ;;  %v1398_v27 = vmax.f32 %v1270_v31, 0.0  ;;  %v1397_v36 = vmax.f32 %v1269_v29, 0.0  ;;  %v808_v45 = vpop.permute.xlu0 %807 }
  0xfe   : > { %v1265_v11 = vadd.f32 %v1118_v25, %v945_v52  ;;  %v1266_v8 = vadd.f32 %v1118_v25, %v946_v50  ;;  %v1267_v44 = vadd.f32 %v1118_v25, %v947_v19  ;;  %v1268_v41 = vadd.f32 %v1118_v25, %v948_v4 }
  0xff   : > { %v679_v28 = vunpack.c.l.bf16 %v2901_v48  ;;  %v680_v63 = vunpack.c.h.bf16 %v2901_v48  ;;  %1609 = vmatpush1.bf16.msra.mxu1 %v1501_v26  ;;  %v1400_v13 = vmax.f32 %v1272_v46, 0.0  ;;  %v673_v43 = vunpack.c.l.bf16 %v2904_v38 }
 0x100   : > { %v1394_v24 = vmax.f32 %v1266_v8, 0.0  ;;  %v1393_v9 = vmax.f32 %v1265_v11, 0.0  ;;  %v1395_v39 = vmax.f32 %v1267_v44, 0.0  ;;  %v3245_v50 = vunpack.c.l.bf16 %v2682_v61 }
 0x101   : > { %v3246_v37 = vunpack.c.h.bf16 %v2682_v61  ;;  %v3247_v51 = vunpack.c.l.bf16 %v2685_v55  ;;  %v3248_v58 = vunpack.c.h.bf16 %v2685_v55  ;;  %v1396_v29 = vmax.f32 %v1268_v41, 0.0  ;;  %v1133_v55 = vpop.permute.xlu1 %1132 }
 0x102   : > { %v957_v12 = vmul.f32 %v813_v57, %v3245_v50  ;;  %v1504_v17 = vpack.c.bf16 %v1398_v27, %v1394_v24  ;;  %v1503_v31 = vpack.c.bf16 %v1397_v36, %v1393_v9  ;;  %v1399_v46 = vmax.f32 %v1271_v2, 0.0  ;;  %v2927_v24 = vld [vmem:[%s2549_s29 + $0x168] sm:$0xff] }
 0x103   : > { %v958_v19 = vmul.f32 %v813_v57, %v3246_v37  ;;  %v959_v4 = vmul.f32 %v813_v57, %v3247_v51  ;;  %v960_v25 = vmul.f32 %v813_v57, %v3248_v58  ;;  %v3249_v11 = vunpack.c.l.bf16 %v2692_v53  ;;  %v1128_v57 = vpop.permute.xlu0 %1127 }
 0x104   : > { %v3250_v44 = vunpack.c.h.bf16 %v2692_v53  ;;  %v3251_v61 = vunpack.c.l.bf16 %v2695_v6  ;;  %v3252_v37 = vunpack.c.h.bf16 %v2695_v6  ;;  %1567 = vmatprep.subr.bf16.mxu0 %v1504_v17  ;;  %v1506_v27 = vpack.c.bf16 %v1400_v13, %v1396_v29 }
 0x105   : > { %v953_v8 = vmul.f32 %v808_v45, %v3249_v11  ;;  %v1277_v41 = vadd.f32 %v1133_v55, %v957_v12  ;;  %v1278_v36 = vadd.f32 %v1133_v55, %v958_v19  ;;  %v1279_v2 = vadd.f32 %v1133_v55, %v959_v4  ;;  %1568 = vmatpush1.bf16.msra.mxu0 %v1503_v31  ;;  %v823_v52 = vpop.permute.xlu1 %822 }
 0x106   : > { %v954_v26 = vmul.f32 %v808_v45, %v3250_v44  ;;  %v955_v50 = vmul.f32 %v808_v45, %v3251_v61  ;;  %v956_v51 = vmul.f32 %v808_v45, %v3252_v37  ;;  %v1280_v9 = vadd.f32 %v1133_v55, %v960_v25  ;;  %v2930_v44 = vld [vmem:[%s2549_s29 + $0x190] sm:$0xff]  ;;  %1610 = vmatprep.subr.bf16.mxu1 %v1506_v27 }
 0x107   : > { %v1273_v58 = vadd.f32 %v1128_v57, %v953_v8  ;;  %v1505_v6 = vpack.c.bf16 %v1399_v46, %v1395_v39  ;;  %v1406_v45 = vmax.f32 %v1278_v36, 0.0  ;;  %v1405_v37 = vmax.f32 %v1277_v41, 0.0  ;;  %v818_v17 = vpop.permute.xlu0 %817 }
 0x108   : > { %v1274_v53 = vadd.f32 %v1128_v57, %v954_v26  ;;  %v1275_v11 = vadd.f32 %v1128_v57, %v955_v50  ;;  %v1276_v61 = vadd.f32 %v1128_v57, %v956_v51  ;;  %v675_v19 = vunpack.c.l.bf16 %v2927_v24 }
 0x109   : > { %v1401_v12 = vmax.f32 %v1273_v58, 0.0  ;;  %v676_v4 = vunpack.c.h.bf16 %v2927_v24  ;;  %1611 = vmatpush1.bf16.msra.mxu1 %v1505_v6  ;;  %v1408_v25 = vmax.f32 %v1280_v9, 0.0  ;;  %v3253_v26 = vunpack.c.l.bf16 %v2702_v49 }
 0x10a   : > { %v1402_v13 = vmax.f32 %v1274_v53, 0.0  ;;  %v1403_v29 = vmax.f32 %v1275_v11, 0.0  ;;  %v3254_v46 = vunpack.c.h.bf16 %v2702_v49  ;;  %v3255_v51 = vunpack.c.l.bf16 %v2705_v54 }
 0x10b   : > { %v965_v39 = vmul.f32 %v823_v52, %v3253_v26  ;;  %v3256_v57 = vunpack.c.h.bf16 %v2705_v54  ;;  %v1404_v36 = vmax.f32 %v1276_v61, 0.0  ;;  %v1507_v9 = vpack.c.bf16 %v1405_v37, %v1401_v12  ;;  %v1143_v54 = vpop.permute.xlu1 %1142 }
 0x10c   : > { %v966_v50 = vmul.f32 %v823_v52, %v3254_v46  ;;  %v967_v55 = vmul.f32 %v823_v52, %v3255_v51  ;;  %v1508_v41 = vpack.c.bf16 %v1406_v45, %v1402_v13  ;;  %v1407_v58 = vmax.f32 %v1279_v2, 0.0  ;;  %v2953_v13 = vld [vmem:[%s2549_s29 + $0x198] sm:$0xff] }
 0x10d   : > { %v968_v27 = vmul.f32 %v823_v52, %v3256_v57  ;;  %v3257_v53 = vunpack.c.l.bf16 %v2716_v47  ;;  %v3258_v6 = vunpack.c.h.bf16 %v2716_v47  ;;  %v3259_v49 = vunpack.c.l.bf16 %v2719_v33  ;;  %v1138_v52 = vpop.permute.xlu0 %1137 }
 0x10e   : > { %v3260_v51 = vunpack.c.h.bf16 %v2719_v33  ;;  %1569 = vmatprep.subr.bf16.mxu0 %v1508_v41  ;;  %v1510_v45 = vpack.c.bf16 %v1408_v25, %v1404_v36  ;;  %v1285_v61 = vadd.f32 %v1143_v54, %v965_v39  ;;  %v1286_v37 = vadd.f32 %v1143_v54, %v966_v50 }
 0x10f   : > { %v961_v11 = vmul.f32 %v818_v17, %v3257_v53  ;;  %v962_v26 = vmul.f32 %v818_v17, %v3258_v6  ;;  %v963_v46 = vmul.f32 %v818_v17, %v3259_v49  ;;  %v1287_v2 = vadd.f32 %v1143_v54, %v967_v55  ;;  %1570 = vmatpush1.bf16.msra.mxu0 %v1507_v9  ;;  %v2956_v6 = vld [vmem:[%s2549_s29 + $0x180] sm:$0xff]  ;;  %v833_v31 = vpop.permute.xlu1 %832 }
 0x110   : > { %v964_v8 = vmul.f32 %v818_v17, %v3260_v51  ;;  %v1288_v12 = vadd.f32 %v1143_v54, %v968_v27  ;;  %1612 = vmatprep.subr.bf16.mxu1 %v1510_v45  ;;  %v1509_v33 = vpack.c.bf16 %v1407_v58, %v1403_v29  ;;  %v1414_v17 = vmax.f32 %v1286_v37, 0.0 }
 0x111   : > { %v1281_v57 = vadd.f32 %v1138_v52, %v961_v11  ;;  %v1282_v47 = vadd.f32 %v1138_v52, %v962_v26  ;;  %v1283_v53 = vadd.f32 %v1138_v52, %v963_v46  ;;  %v1413_v51 = vmax.f32 %v1285_v61, 0.0  ;;  %v828_v41 = vpop.permute.xlu0 %827  ;;  %v3267_v11 = vld [vmem:[#allocation5_spill] sm:$0xff] }
 0x112   : > { %v1284_v49 = vadd.f32 %v1138_v52, %v964_v8  ;;  %v687_v50 = vunpack.c.l.bf16 %v2953_v13  ;;  %1613 = vmatpush1.bf16.msra.mxu1 %v1509_v33  ;;  %v1416_v27 = vmax.f32 %v1288_v12, 0.0  ;;  %v3261_v8 = vunpack.c.l.bf16 %v2726_v7 }
 0x113   : > { %v1410_v25 = vmax.f32 %v1282_v47, 0.0  ;;  %v1409_v39 = vmax.f32 %v1281_v57, 0.0  ;;  %v1411_v36 = vmax.f32 %v1283_v53, 0.0  ;;  %v3262_v58 = vunpack.c.h.bf16 %v2726_v7 }
 0x114   : > { %v973_v29 = vmul.f32 %v833_v31, %v3261_v8  ;;  %v3263_v46 = vunpack.c.l.bf16 %v2729_v62  ;;  %v3264_v52 = vunpack.c.h.bf16 %v2729_v62  ;;  %v1412_v37 = vmax.f32 %v1284_v49, 0.0  ;;  %v1153_v62 = vpop.permute.xlu1 %1152 }
 0x115   : > { %v974_v26 = vmul.f32 %v833_v31, %v3262_v58  ;;  %v1512_v61 = vpack.c.bf16 %v1414_v17, %v1410_v25  ;;  %v1511_v12 = vpack.c.bf16 %v1413_v51, %v1409_v39  ;;  %v1415_v57 = vmax.f32 %v1287_v2, 0.0  ;;  %v2979_v25 = vld [vmem:[%s2549_s29 + $0x188] sm:$0xff] }
 0x116   : > { %v975_v54 = vmul.f32 %v833_v31, %v3263_v46  ;;  %v976_v45 = vmul.f32 %v833_v31, %v3264_v52  ;;  %v3265_v47 = vunpack.c.l.bf16 %v2740_v60  ;;  %v3266_v33 = vunpack.c.h.bf16 %v2740_v60  ;;  %v1148_v31 = vpop.permute.xlu0 %1147 }
 0x117   : > { %v3268_v7 = vunpack.c.l.bf16 %v3267_v11  ;;  %v3269_v46 = vunpack.c.h.bf16 %v3267_v11  ;;  %1571 = vmatprep.subr.bf16.mxu0 %v1512_v61  ;;  %v1514_v17 = vpack.c.bf16 %v1416_v27, %v1412_v37  ;;  %v1293_v49 = vadd.f32 %v1153_v62, %v973_v29 }
 0x118   : > { %v969_v53 = vmul.f32 %v828_v41, %v3265_v47  ;;  %v970_v8 = vmul.f32 %v828_v41, %v3266_v33  ;;  %v1294_v51 = vadd.f32 %v1153_v62, %v974_v26  ;;  %v1295_v2 = vadd.f32 %v1153_v62, %v975_v54  ;;  %1572 = vmatpush1.bf16.msra.mxu0 %v1511_v12  ;;  %v2982_v33 = vld [vmem:[%s2549_s29 + $0x1b0] sm:$0xff]  ;;  %v843_v55 = vpop.permute.xlu1 %842 }
 0x119   : > { %v971_v58 = vmul.f32 %v828_v41, %v3268_v7  ;;  %v972_v9 = vmul.f32 %v828_v41, %v3269_v46  ;;  %v1296_v39 = vadd.f32 %v1153_v62, %v976_v45  ;;  %1614 = vmatprep.subr.bf16.mxu1 %v1514_v17  ;;  %v1513_v11 = vpack.c.bf16 %v1415_v57, %v1411_v36  ;;  %v3273_v62 = vld [vmem:[#allocation7_spill] sm:$0xff] }
 0x11a   : > { %v1289_v52 = vadd.f32 %v1148_v31, %v969_v53  ;;  %v1290_v60 = vadd.f32 %v1148_v31, %v970_v8  ;;  %v1422_v41 = vmax.f32 %v1294_v51, 0.0  ;;  %v1421_v46 = vmax.f32 %v1293_v49, 0.0  ;;  %v838_v61 = vpop.permute.xlu0 %837  ;;  %v3270_v8 = vld [vmem:[#allocation6_spill] sm:$0xff] }
 0x11b   : > { %v1291_v47 = vadd.f32 %v1148_v31, %v971_v58  ;;  %v1292_v7 = vadd.f32 %v1148_v31, %v972_v9  ;;  %v683_v26 = vunpack.c.l.bf16 %v2979_v25  ;;  %v684_v54 = vunpack.c.h.bf16 %v2979_v25  ;;  %1615 = vmatpush1.bf16.msra.mxu1 %v1513_v11 }
 0x11c   : > { %v1418_v27 = vmax.f32 %v1290_v60, 0.0  ;;  %v1417_v29 = vmax.f32 %v1289_v52, 0.0  ;;  %v1424_v45 = vmax.f32 %v1296_v39, 0.0  ;;  %v693_v12 = vunpack.c.l.bf16 %v2982_v33 }
 0x11d   : > { %v1419_v37 = vmax.f32 %v1291_v47, 0.0  ;;  %v694_v53 = vunpack.c.h.bf16 %v2982_v33  ;;  %v3271_v9 = vunpack.c.l.bf16 %v3270_v8  ;;  %v3272_v57 = vunpack.c.h.bf16 %v3270_v8 }
 0x11e   : > { %v3274_v31 = vunpack.c.l.bf16 %v3273_v62  ;;  %v3275_v49 = vunpack.c.h.bf16 %v3273_v62  ;;  %v1516_v52 = vpack.c.bf16 %v1422_v41, %v1418_v27  ;;  %v1420_v39 = vmax.f32 %v1292_v7, 0.0  ;;  %v1163_v62 = vpop.permute.xlu1 %1162  ;;  %v3005_v27 = vld [vmem:[%s2549_s29 + $0x1b8] sm:$0xff] }
 0x11f   : > { %v981_v36 = vmul.f32 %v843_v55, %v3271_v9  ;;  %v982_v58 = vmul.f32 %v843_v55, %v3272_v57  ;;  %v1515_v60 = vpack.c.bf16 %v1421_v46, %v1417_v29  ;;  %v1423_v47 = vmax.f32 %v1295_v2, 0.0 }
 0x120   : > { %v983_v17 = vmul.f32 %v843_v55, %v3274_v31  ;;  %v984_v51 = vmul.f32 %v843_v55, %v3275_v49  ;;  %v977_v11 = vmul.f32 %v838_v61, %v657_v40  ;;  %v978_v9 = vmul.f32 %v838_v61, %v658_v23  ;;  %v1158_v55 = vpop.permute.xlu0 %1157  ;;  %1573 = vmatprep.subr.bf16.mxu0 %v1516_v52  ;;  %v3008_v31 = vld [vmem:[%s2549_s29 + $0x1a0] sm:$0xff] }
 0x121   : > { %v979_v8 = vmul.f32 %v838_v61, %v659_v16  ;;  %v980_v57 = vmul.f32 %v838_v61, %v660_v59  ;;  %v1518_v41 = vpack.c.bf16 %v1424_v45, %v1420_v39  ;;  %v1301_v7 = vadd.f32 %v1163_v62, %v981_v36  ;;  %1574 = vmatpush1.bf16.msra.mxu0 %v1515_v60 }
 0x122   : > { %v1302_v46 = vadd.f32 %v1163_v62, %v982_v58  ;;  %v1303_v2 = vadd.f32 %v1163_v62, %v983_v17  ;;  %v1304_v40 = vadd.f32 %v1163_v62, %v984_v51  ;;  %v1297_v29 = vadd.f32 %v1158_v55, %v977_v11  ;;  %v853_v49 = vpop.permute.xlu1 %852 }
 0x123   : > { %v1298_v22 = vadd.f32 %v1158_v55, %v978_v9  ;;  %v1299_v23 = vadd.f32 %v1158_v55, %v979_v8  ;;  %1616 = vmatprep.subr.bf16.mxu1 %v1518_v41  ;;  %v1300_v16 = vadd.f32 %v1158_v55, %v980_v57  ;;  %v1517_v5 = vpack.c.bf16 %v1423_v47, %v1419_v37 }
 0x124   : > { %v1430_v59 = vmax.f32 %v1302_v46, 0.0  ;;  %v1429_v61 = vmax.f32 %v1301_v7, 0.0  ;;  %v848_v52 = vpop.permute.xlu0 %847  ;;  %v1425_v36 = vmax.f32 %v1297_v29, 0.0  ;;  %v695_v58 = vunpack.c.l.bf16 %v3005_v27  ;;  %v3031_v29 = vld [vmem:[%s2549_s29 + $0x1a8] sm:$0xff] }
 0x125   : > { %v1426_v45 = vmax.f32 %v1298_v22, 0.0  ;;  %v696_v17 = vunpack.c.h.bf16 %v3005_v27  ;;  %1617 = vmatpush1.bf16.msra.mxu1 %v1517_v5  ;;  %v1432_v51 = vmax.f32 %v1304_v40, 0.0  ;;  %v1427_v39 = vmax.f32 %v1299_v23, 0.0  ;;  %v3034_v23 = vld [vmem:[%s2549_s29 + $0x1d0] sm:$0xff] }
 0x126   : > { %v689_v60 = vunpack.c.l.bf16 %v3008_v31  ;;  %v690_v11 = vunpack.c.h.bf16 %v3008_v31  ;;  %v989_v37 = vmul.f32 %v853_v49, %v669_v15  ;;  %v990_v47 = vmul.f32 %v853_v49, %v670_v0  ;;  %v1173_v30 = vpop.permute.xlu1 %1172 }
 0x127   : > { %v991_v9 = vmul.f32 %v853_v49, %v671_v18  ;;  %v992_v8 = vmul.f32 %v853_v49, %v672_v3  ;;  %v1520_v57 = vpack.c.bf16 %v1430_v59, %v1426_v45  ;;  %v1428_v62 = vmax.f32 %v1300_v16, 0.0 }
 0x128   : > { %v1519_v55 = vpack.c.bf16 %v1429_v61, %v1425_v36  ;;  %v1431_v41 = vmax.f32 %v1303_v2, 0.0  ;;  %v985_v7 = vmul.f32 %v848_v52, %v665_v20  ;;  %v986_v15 = vmul.f32 %v848_v52, %v666_v21  ;;  %v1168_v18 = vpop.permute.xlu0 %1167 }
 0x129   : > { %v987_v35 = vmul.f32 %v848_v52, %v667_v14  ;;  %v988_v0 = vmul.f32 %v848_v52, %v668_v1  ;;  %1575 = vmatprep.subr.bf16.mxu0 %v1520_v57  ;;  %v1522_v3 = vpack.c.bf16 %v1432_v51, %v1428_v62  ;;  %v1309_v46 = vadd.f32 %v1173_v30, %v989_v37 }
 0x12a   : > { %v1310_v40 = vadd.f32 %v1173_v30, %v990_v47  ;;  %v1311_v2 = vadd.f32 %v1173_v30, %v991_v9  ;;  %v1312_v20 = vadd.f32 %v1173_v30, %v992_v8  ;;  %v1305_v22 = vadd.f32 %v1168_v18, %v985_v7  ;;  %1576 = vmatpush1.bf16.msra.mxu0 %v1519_v55  ;;  %v863_v5 = vpop.permute.xlu1 %862 }
 0x12b   : > { %v1306_v56 = vadd.f32 %v1168_v18, %v986_v15  ;;  %v1307_v21 = vadd.f32 %v1168_v18, %v987_v35  ;;  %1618 = vmatprep.subr.bf16.mxu1 %v1522_v3  ;;  %v1308_v14 = vadd.f32 %v1168_v18, %v988_v0  ;;  %v1521_v10 = vpack.c.bf16 %v1431_v41, %v1427_v39  ;;  %v3057_v3 = vld [vmem:[%s2549_s29 + $0x1d8] sm:$0xff] }
 0x12c   : > { %v1438_v1 = vmax.f32 %v1310_v40, 0.0  ;;  %v1437_v16 = vmax.f32 %v1309_v46, 0.0  ;;  %v858_v59 = vpop.permute.xlu0 %857  ;;  %v1433_v49 = vmax.f32 %v1305_v22, 0.0  ;;  %v691_v52 = vunpack.c.l.bf16 %v3031_v29 }
 0x12d   : > { %v1434_v61 = vmax.f32 %v1306_v56, 0.0  ;;  %v692_v45 = vunpack.c.h.bf16 %v3031_v29  ;;  %1619 = vmatpush1.bf16.msra.mxu1 %v1521_v10  ;;  %v1440_v36 = vmax.f32 %v1312_v20, 0.0  ;;  %v1435_v51 = vmax.f32 %v1307_v21, 0.0 }
 0x12e   : > { %v701_v37 = vunpack.c.l.bf16 %v3034_v23  ;;  %v702_v47 = vunpack.c.h.bf16 %v3034_v23  ;;  %v997_v39 = vmul.f32 %v863_v5, %v677_v32  ;;  %v998_v9 = vmul.f32 %v863_v5, %v678_v42  ;;  %v1183_v48 = vpop.permute.xlu1 %1182 }
 0x12f   : > { %v999_v8 = vmul.f32 %v863_v5, %v679_v28  ;;  %v1000_v57 = vmul.f32 %v863_v5, %v680_v63  ;;  %v1524_v62 = vpack.c.bf16 %v1438_v1, %v1434_v61  ;;  %v1436_v55 = vmax.f32 %v1308_v14, 0.0 }
 0x130   : > { %v1523_v41 = vpack.c.bf16 %v1437_v16, %v1433_v49  ;;  %v1439_v7 = vmax.f32 %v1311_v2, 0.0  ;;  %v993_v15 = vmul.f32 %v858_v59, %v673_v43  ;;  %v3276_v35 = vunpack.c.h.bf16 %v2904_v38  ;;  %v1178_v28 = vpop.permute.xlu0 %1177  ;;  %v3060_v2 = vld [vmem:[%s2549_s29 + $0x1c0] sm:$0xff] }
 0x131   : > { %v995_v34 = vmul.f32 %v858_v59, %v675_v19  ;;  %v996_v42 = vmul.f32 %v858_v59, %v676_v4  ;;  %1577 = vmatprep.subr.bf16.mxu0 %v1524_v62  ;;  %v1526_v63 = vpack.c.bf16 %v1440_v36, %v1436_v55  ;;  %v1317_v0 = vadd.f32 %v1183_v48, %v997_v39 }
 0x132   : > { %v994_v32 = vmul.f32 %v858_v59, %v3276_v35  ;;  %v1318_v30 = vadd.f32 %v1183_v48, %v998_v9  ;;  %v1319_v18 = vadd.f32 %v1183_v48, %v999_v8  ;;  %v1320_v43 = vadd.f32 %v1183_v48, %v1000_v57  ;;  %1578 = vmatpush1.bf16.msra.mxu0 %v1523_v41  ;;  %v873_v22 = vpop.permute.xlu1 %872 }
 0x133   : > { %v1313_v46 = vadd.f32 %v1178_v28, %v993_v15  ;;  %v1315_v40 = vadd.f32 %v1178_v28, %v995_v34  ;;  %1620 = vmatprep.subr.bf16.mxu1 %v1526_v63  ;;  %v1316_v19 = vadd.f32 %v1178_v28, %v996_v42  ;;  %v1525_v24 = vpack.c.bf16 %v1439_v7, %v1435_v51 }
 0x134   : > { %v1314_v38 = vadd.f32 %v1178_v28, %v994_v32  ;;  %v1446_v4 = vmax.f32 %v1318_v30, 0.0  ;;  %v1445_v20 = vmax.f32 %v1317_v0, 0.0  ;;  %v868_v56 = vpop.permute.xlu0 %867  ;;  %v703_v10 = vunpack.c.l.bf16 %v3057_v3  ;;  %v3083_v30 = vld [vmem:[%s2549_s29 + $0x1c8] sm:$0xff] }
 0x135   : > { %v1441_v14 = vmax.f32 %v1313_v46, 0.0  ;;  %v704_v1 = vunpack.c.h.bf16 %v3057_v3  ;;  %1621 = vmatpush1.bf16.msra.mxu1 %v1525_v24  ;;  %v1448_v16 = vmax.f32 %v1320_v43, 0.0  ;;  %v1443_v5 = vmax.f32 %v1315_v40, 0.0 }
 0x136   : > { %v1442_v21 = vmax.f32 %v1314_v38, 0.0  ;;  %v697_v59 = vunpack.c.l.bf16 %v3060_v2  ;;  %v698_v61 = vunpack.c.h.bf16 %v3060_v2  ;;  %v3277_v49 = vunpack.c.l.bf16 %v2930_v44  ;;  %v3086_v38 = vld [vmem:[%s2549_s29 + $0x1f0] sm:$0xff] }
 0x137   : > { %v3278_v51 = vunpack.c.h.bf16 %v2930_v44  ;;  %v1007_v9 = vmul.f32 %v873_v22, %v687_v50  ;;  %v3279_v8 = vunpack.c.h.bf16 %v2953_v13  ;;  %v1444_v55 = vmax.f32 %v1316_v19, 0.0  ;;  %v1193_v13 = vpop.permute.xlu1 %1192 }
 0x138   : > { %v1005_v36 = vmul.f32 %v873_v22, %v3277_v49  ;;  %v1528_v62 = vpack.c.bf16 %v1446_v4, %v1442_v21  ;;  %v1527_v41 = vpack.c.bf16 %v1445_v20, %v1441_v14  ;;  %v1447_v7 = vmax.f32 %v1319_v18, 0.0  ;;  %v1188_v42 = vpop.permute.xlu0 %1187 }
 0x139   : > { %v1006_v39 = vmul.f32 %v873_v22, %v3278_v51  ;;  %v1008_v57 = vmul.f32 %v873_v22, %v3279_v8  ;;  %v3280_v15 = vunpack.c.l.bf16 %v2956_v6  ;;  %v3281_v32 = vunpack.c.h.bf16 %v2956_v6 }
 0x13a   : > { %v1003_v44 = vmul.f32 %v868_v56, %v683_v26  ;;  %v1004_v50 = vmul.f32 %v868_v56, %v684_v54  ;;  %1579 = vmatprep.subr.bf16.mxu0 %v1528_v62  ;;  %v1530_v48 = vpack.c.bf16 %v1448_v16, %v1444_v55  ;;  %v1325_v28 = vadd.f32 %v1193_v13, %v1005_v36 }
 0x13b   : > { %v1001_v35 = vmul.f32 %v868_v56, %v3280_v15  ;;  %v1002_v34 = vmul.f32 %v868_v56, %v3281_v32  ;;  %v1326_v63 = vadd.f32 %v1193_v13, %v1006_v39  ;;  %v1327_v0 = vadd.f32 %v1193_v13, %v1007_v9  ;;  %1580 = vmatpush1.bf16.msra.mxu0 %v1527_v41  ;;  %v883_v19 = vpop.permute.xlu1 %882 }
 0x13c   : > { %v1328_v18 = vadd.f32 %v1193_v13, %v1008_v57  ;;  %v1323_v46 = vadd.f32 %v1188_v42, %v1003_v44  ;;  %1622 = vmatprep.subr.bf16.mxu1 %v1530_v48  ;;  %v1324_v26 = vadd.f32 %v1188_v42, %v1004_v50  ;;  %v1529_v25 = vpack.c.bf16 %v1447_v7, %v1443_v5  ;;  %v878_v24 = vpop.permute.xlu0 %877 }
 0x13d   : > { %v1321_v43 = vadd.f32 %v1188_v42, %v1001_v35  ;;  %v1322_v6 = vadd.f32 %v1188_v42, %v1002_v34  ;;  %v1454_v54 = vmax.f32 %v1326_v63, 0.0  ;;  %v1453_v40 = vmax.f32 %v1325_v28, 0.0  ;;  %v3109_v35 = vld [vmem:[%s2549_s29 + $0x1f8] sm:$0xff]  ;;  %v3112_v34 = vld [vmem:[%s2549_s29 + $0x1e0] sm:$0xff] }
 0x13e   : > { %v699_v22 = vunpack.c.l.bf16 %v3083_v30  ;;  %v700_v56 = vunpack.c.h.bf16 %v3083_v30  ;;  %1623 = vmatpush1.bf16.msra.mxu1 %v1529_v25  ;;  %v1456_v21 = vmax.f32 %v1328_v18, 0.0  ;;  %v1451_v14 = vmax.f32 %v1323_v46, 0.0 }
 0x13f   : > { %v1450_v4 = vmax.f32 %v1322_v6, 0.0  ;;  %v1449_v20 = vmax.f32 %v1321_v43, 0.0  ;;  %v709_v16 = vunpack.c.l.bf16 %v3086_v38  ;;  %v710_v49 = vunpack.c.h.bf16 %v3086_v38  ;;  %v1203_v27 = vpop.permute.xlu1 %1202 }
 0x140   : > { %v1013_v5 = vmul.f32 %v883_v19, %v693_v12  ;;  %v1014_v36 = vmul.f32 %v883_v19, %v694_v53  ;;  %v1015_v51 = vmul.f32 %v883_v19, %v695_v58  ;;  %v1016_v39 = vmul.f32 %v883_v19, %v696_v17  ;;  %v1198_v58 = vpop.permute.xlu0 %1197 }
 0x141   : > { %v1532_v9 = vpack.c.bf16 %v1454_v54, %v1450_v4  ;;  %v1452_v8 = vmax.f32 %v1324_v26, 0.0  ;;  %v1531_v57 = vpack.c.bf16 %v1453_v40, %v1449_v20  ;;  %v1455_v62 = vmax.f32 %v1327_v0, 0.0 }
 0x142   : > { %v1009_v55 = vmul.f32 %v878_v24, %v689_v60  ;;  %v1010_v12 = vmul.f32 %v878_v24, %v690_v11  ;;  %v1011_v33 = vmul.f32 %v878_v24, %v691_v52  ;;  %v1012_v53 = vmul.f32 %v878_v24, %v692_v45 }
 0x143   : > { %1581 = vmatprep.subr.bf16.mxu0 %v1532_v9  ;;  %v1534_v17 = vpack.c.bf16 %v1456_v21, %v1452_v8  ;;  %v1333_v41 = vadd.f32 %v1203_v27, %v1013_v5  ;;  %v1334_v7 = vadd.f32 %v1203_v27, %v1014_v36  ;;  %v1335_v15 = vadd.f32 %v1203_v27, %v1015_v51  ;;  %v893_v50 = vpop.permute.xlu1 %892  ;;  %v582_v5 = vld [vmem:[%s2549_s29 + $0x1e8] sm:$0xff] }
 0x144   : > { %v1336_v60 = vadd.f32 %v1203_v27, %v1016_v39  ;;  %v1329_v32 = vadd.f32 %v1198_v58, %v1009_v55  ;;  %v1330_v31 = vadd.f32 %v1198_v58, %v1010_v12  ;;  %v1331_v11 = vadd.f32 %v1198_v58, %v1011_v33  ;;  %1582 = vmatpush1.bf16.msra.mxu0 %v1531_v57  ;;  %v888_v13 = vpop.permute.xlu0 %887 }
 0x145   : > { %1624 = vmatprep.subr.bf16.mxu1 %v1534_v17  ;;  %v1332_v52 = vadd.f32 %v1198_v58, %v1012_v53  ;;  %v1533_v29 = vpack.c.bf16 %v1455_v62, %v1451_v14  ;;  %v1462_v45 = vmax.f32 %v1334_v7, 0.0  ;;  %v1461_v44 = vmax.f32 %v1333_v41, 0.0 }
 0x146   : > { %v1458_v42 = vmax.f32 %v1330_v31, 0.0  ;;  %v1457_v48 = vmax.f32 %v1329_v32, 0.0  ;;  %v711_v28 = vunpack.c.l.bf16 %v3109_v35  ;;  %v712_v63 = vunpack.c.h.bf16 %v3109_v35 }
 0x147   : > { %1625 = vmatpush1.bf16.msra.mxu1 %v1533_v29  ;;  %v1464_v0 = vmax.f32 %v1336_v60, 0.0  ;;  %v1459_v30 = vmax.f32 %v1331_v11, 0.0  ;;  %v705_v18 = vunpack.c.l.bf16 %v3112_v34  ;;  %v706_v43 = vunpack.c.h.bf16 %v3112_v34 }
 0x148   : > { %v1021_v6 = vmul.f32 %v893_v50, %v701_v37  ;;  %v1022_v46 = vmul.f32 %v893_v50, %v702_v47  ;;  %v1023_v26 = vmul.f32 %v893_v50, %v703_v10  ;;  %v1024_v25 = vmul.f32 %v893_v50, %v704_v1  ;;  %v1213_v47 = vpop.permute.xlu1 %1212  ;;  %v1208_v21 = vpop.permute.xlu0 %1207 }
 0x149   : > { %v1536_v54 = vpack.c.bf16 %v1462_v45, %v1458_v42  ;;  %v1460_v40 = vmax.f32 %v1332_v52, 0.0  ;;  %v1535_v19 = vpack.c.bf16 %v1461_v44, %v1457_v48  ;;  %v1463_v24 = vmax.f32 %v1335_v15, 0.0 }
 0x14a   : > { %v1017_v4 = vmul.f32 %v888_v13, %v697_v59  ;;  %v1018_v37 = vmul.f32 %v888_v13, %v698_v61  ;;  %v1019_v20 = vmul.f32 %v888_v13, %v699_v22  ;;  %v1020_v23 = vmul.f32 %v888_v13, %v700_v56 }
 0x14b   : > { %1583 = vmatprep.subr.bf16.mxu0 %v1536_v54  ;;  %v1538_v10 = vpack.c.bf16 %v1464_v0, %v1460_v40  ;;  %v1341_v14 = vadd.f32 %v1213_v47, %v1021_v6  ;;  %v1342_v3 = vadd.f32 %v1213_v47, %v1022_v46  ;;  %v1343_v1 = vadd.f32 %v1213_v47, %v1023_v26  ;;  %v2107_v40 = vld [vmem:[%s2791_s27 + $0x4] ss:$16 sps:$4 sm:$0xff]  }
 0x14c   : > { %v1344_v36 = vadd.f32 %v1213_v47, %v1024_v25  ;;  %v1337_v51 = vadd.f32 %v1208_v21, %v1017_v4  ;;  %v1338_v39 = vadd.f32 %v1208_v21, %v1018_v37  ;;  %v1339_v9 = vadd.f32 %v1208_v21, %v1019_v20  ;;  %1584 = vmatpush1.bf16.msra.mxu0 %v1535_v19  ;;  %v903_v22 = vpop.permute.xlu1 %902  ;;  %v898_v56 = vpop.permute.xlu0 %897  ;;  %v2110_v4 = vld [vmem:[%s2791_s27 + $0xc] ss:$16 sps:$4 sm:$0xff]   ;;  %v2102_v37 = vld [vmem:[%s3190_s0] ss:$8 sps:$4 sm:$0xff]  }
 0x14d   : > { %1626 = vmatprep.subr.bf16.mxu1 %v1538_v10  ;;  %v1340_v59 = vadd.f32 %v1208_v21, %v1020_v23  ;;  %v1537_v8 = vpack.c.bf16 %v1463_v24, %v1459_v30  ;;  %v1470_v2 = vmax.f32 %v1342_v3, 0.0  ;;  %v1469_v61 = vmax.f32 %v1341_v14, 0.0  ;;  %v2105_v20 = vld [vmem:[%s2791_s27] ss:$16 sps:$4 sm:$0xff]   ;;  %v2108_v23 = vld [vmem:[%s2791_s27 + $0x8] ss:$16 sps:$4 sm:$0xff]   ;;  %s1876_s27 = scalar_lea.vmem (%p2217_p5), %s3196_s6, %s2074_s18 }
 0x14e   : > { %v707_v57 = vunpack.c.l.bf16 %v582_v5  ;;  %v708_v62 = vunpack.c.h.bf16 %v582_v5  ;;  %v1466_v55 = vmax.f32 %v1338_v39, 0.0  ;;  %v1465_v12 = vmax.f32 %v1337_v51, 0.0  ;;  %v2111_v21 = vld [vmem:[%s3194_s4] sm:$0xff]  }
 0x14f   : > { %1627 = vmatpush1.bf16.msra.mxu1 %v1537_v8  ;;  %v1472_v33 = vmax.f32 %v1344_v36, 0.0  ;;  %v1467_v53 = vmax.f32 %v1339_v9, 0.0  ;;  %v1029_v27 = vmul.f32 %v903_v22, %v709_v16  ;;  %v1030_v58 = vmul.f32 %v903_v22, %v710_v49 }
 0x150   : > { %v1031_v17 = vmul.f32 %v903_v22, %v711_v28  ;;  %v1032_v41 = vmul.f32 %v903_v22, %v712_v63  ;;  %v1540_v7 = vpack.c.bf16 %v1470_v2, %v1466_v55  ;;  %v1468_v15 = vmax.f32 %v1340_v59, 0.0  ;;  %v1223_v52 = vpop.permute.xlu1 %1222  ;;  %v1218_v29 = vpop.permute.xlu0 %1217 }
 0x151   : > { %v1539_v35 = vpack.c.bf16 %v1469_v61, %v1465_v12  ;;  %v1471_v60 = vmax.f32 %v1343_v1, 0.0  ;;  %v1025_v32 = vmul.f32 %v898_v56, %v705_v18  ;;  %v1026_v31 = vmul.f32 %v898_v56, %v706_v43 }
 0x152   : > { %v1027_v11 = vmul.f32 %v898_v56, %v707_v57  ;;  %v1028_v34 = vmul.f32 %v898_v56, %v708_v62  ;;  %1585 = vmatprep.subr.bf16.mxu0 %v1540_v7  ;;  %v1542_v45 = vpack.c.bf16 %v1472_v33, %v1468_v15  ;;  %v1349_v44 = vadd.f32 %v1223_v52, %v1029_v27 }
 0x153   : > { %v1350_v50 = vadd.f32 %v1223_v52, %v1030_v58  ;;  %v1351_v16 = vadd.f32 %v1223_v52, %v1031_v17  ;;  %v1352_v13 = vadd.f32 %v1223_v52, %v1032_v41  ;;  %v1345_v38 = vadd.f32 %v1218_v29, %v1025_v32  ;;  %1586 = vmatpush1.bf16.msra.mxu0 %v1539_v35 }
 0x154   : > { %v1346_v49 = vadd.f32 %v1218_v29, %v1026_v31  ;;  %v1347_v42 = vadd.f32 %v1218_v29, %v1027_v11  ;;  %1628 = vmatprep.subr.bf16.mxu1 %v1542_v45  ;;  %v1348_v48 = vadd.f32 %v1218_v29, %v1028_v34  ;;  %v1541_v28 = vpack.c.bf16 %v1471_v60, %v1467_v53 }
 0x155   : > { %v1478_v63 = vmax.f32 %v1350_v50, 0.0  ;;  %v1477_v0 = vmax.f32 %v1349_v44, 0.0  ;;  %v1480_v18 = vmax.f32 %v1352_v13, 0.0  ;;  %v1473_v43 = vmax.f32 %v1345_v38, 0.0 }
 0x156   : > { %v1474_v30 = vmax.f32 %v1346_v49, 0.0  ;;  %v1475_v6 = vmax.f32 %v1347_v42, 0.0  ;;  %1629 = vmatpush1.bf16.msra.mxu1 %v1541_v28  ;;  %v1476_v46 = vmax.f32 %v1348_v48, 0.0  ;;  %v1479_v26 = vmax.f32 %v1351_v16, 0.0 }
 0x157   : > { %v1543_v54 = vpack.c.bf16 %v1477_v0, %v1473_v43  ;;  %v3282_v47 = vmov 0  }
 0x158   : > { %v1544_v25 = vpack.c.bf16 %v1478_v63, %v1474_v30  ;;  %v1546_v19 = vpack.c.bf16 %v1480_v18, %v1476_v46  ;;  %v1545_v24 = vpack.c.bf16 %v1479_v26, %v1475_v6 }
 0x15a   : > { %1587 = vmatprep.subr.bf16.mxu0 %v1544_v25  ;;  %1630 = vmatprep.subr.bf16.mxu1 %v1546_v19 }
 0x15b   : > { %1588 = vmatpush1.bf16.msra.mxu0 %v1543_v54  ;;  %1631 = vmatpush1.bf16.msra.mxu1 %v1545_v24 }
 0x15c   : > { %1739 = vmatprep.subr.bf16.mxu0 %v2107_v40  ;;  %1782 = vmatprep.subr.bf16.mxu1 %v2110_v4 }
 0x15e   : > { %1590 = vmatmul.mubr.bf16.vlgmr.msra.gmra.mrb[0].mxu0 %v2102_v37  ;;  %1633 = vmatmul.mubr.bf16.vlgmr.msra.gmra.mrb[0].mxu1 %v2102_v37 }
 0x15f   : > { %1740 = vmatpush1.bf16.msra.mxu0 %v2105_v20  ;;  %1783 = vmatpush1.bf16.msra.mxu1 %v2108_v23 }
 0x160   : > { %1771 = vmatprep.mubr.bf16.mxu0 %v3282_v47  ;;  %1814 = vmatprep.mubr.bf16.mxu1 %v3282_v47 }
 0x166   : > { %2059 = vmatmul.mubr.msk.bf16.vlgmr.msra.gmra.mrb[4].mxu0 %vm1735_vm0, %v2111_v21  ;;  %2060 = vmatmul.mubr.msk.bf16.vlgmr.msra.gmra.mrb[4].mxu1 %vm1735_vm0, %v2111_v21 }
 0x231   : > { %v1591_v10 = vpop.f32.mrb[0].mxu0  ;;  %v1634_v3 = vpop.f32.mrb[0].mxu1 }
 0x232   : > { %v1681_v14 = vmul.f32 %v1591_v10, %v1591_v10  ;;  %v1593_v1 = vpop.f32.mrb[1].mxu0  ;;  %v1636_v39 = vpop.f32.mrb[1].mxu1  ;;  %v1683_v59 = vmul.f32 %v1634_v3, %v1634_v3 }
 0x233   : > { %v2070_v5 = vpack.c.bf16 %v1593_v1, %v1591_v10  ;;  %v1671_v36 = vadd.f32 %v1593_v1, %v1591_v10  ;;  %v1682_v51 = vmul.f32 %v1593_v1, %v1593_v1  ;;  %v1595_v9 = vpop.f32.mrb[2].mxu0  ;;  %v2071_v8 = vpack.c.bf16 %v1636_v39, %v1634_v3  ;;  %v1638_v61 = vpop.f32.mrb[2].mxu1 }
 0x234   : > { %v1685_v2 = vmul.f32 %v1595_v9, %v1595_v9  ;;  %v1597_v22 = vpop.f32.mrb[3].mxu0  ;;  %v1640_v55 = vpop.f32.mrb[3].mxu1  ;;  %v1687_v27 = vmul.f32 %v1638_v61, %v1638_v61  ;;  %v1684_v7 = vmul.f32 %v1636_v39, %v1636_v39 }
 0x235   : > { %1667 = vst [vmem:[%s3148_s23] sm:$0xff] %v2070_v5  ;;  %v2072_v56 = vpack.c.bf16 %v1597_v22, %v1595_v9  ;;  %v1676_v57 = vadd.f32 %v1597_v22, %v1595_v9  ;;  %v1686_v62 = vmul.f32 %v1597_v22, %v1597_v22  ;;  %1668 = vst [vmem:[%s3148_s23 + $0x8] sm:$0xff] %v2071_v8 }
 0x236   : > { %v2073_v12 = vpack.c.bf16 %v1640_v55, %v1638_v61  ;;  %v1672_v33 = vadd.f32 %v1671_v36, %v1634_v3  ;;  %v1689_v53 = vadd.f32 %v1682_v51, %v1681_v14  ;;  %v1688_v32 = vmul.f32 %v1640_v55, %v1640_v55 }
 0x237   : > { %1669 = vst [vmem:[%s3148_s23 + $0x10] sm:$0xff] %v2072_v56  ;;  %v1677_v58 = vadd.f32 %v1676_v57, %v1638_v61  ;;  %v1694_v17 = vadd.f32 %v1686_v62, %v1685_v2 }
 0x238   : > { %1670 = vst [vmem:[%s3148_s23 + $0x18] sm:$0xff] %v2073_v12  ;;  %v1673_v41 = vadd.f32 %v1672_v33, %v1636_v39  ;;  %v1690_v15 = vadd.f32 %v1689_v53, %v1683_v59 }
 0x239   : > { %v1773_v35 = vpop.f32.mrb[4].mxu0  ;;  %v1678_v60 = vadd.f32 %v1677_v58, %v1640_v55  ;;  %v1695_v31 = vadd.f32 %v1694_v17, %v1687_v27  ;;  %v1816_v52 = vpop.f32.mrb[4].mxu1 }
 0x23a   : > { %1674 = vadd.xlane.f32.xlu0 %v1673_v41  ;;  %v1835_v11 = vmul.f32 %v1773_v35, %v1773_v35  ;;  %v1775_v34 = vpop.f32.mrb[5].mxu0  ;;  %v1691_v29 = vadd.f32 %v1690_v15, %v1684_v7  ;;  %v1837_v16 = vmul.f32 %v1816_v52, %v1816_v52  ;;  %v1818_v13 = vpop.f32.mrb[5].mxu1 }
 0x23b   : > { %v1825_v45 = vadd.f32 %v1775_v34, %v1773_v35  ;;  %v1836_v44 = vmul.f32 %v1775_v34, %v1775_v34  ;;  %v1777_v50 = vpop.f32.mrb[6].mxu0  ;;  %1679 = vadd.xlane.f32.xlu1 %v1678_v60  ;;  %v1696_v38 = vadd.f32 %v1695_v31, %v1688_v32  ;;  %v1838_v48 = vmul.f32 %v1818_v13, %v1818_v13  ;;  %v1820_v28 = vpop.f32.mrb[6].mxu1 }
 0x23c   : > { %v1839_v49 = vmul.f32 %v1777_v50, %v1777_v50  ;;  %v1779_v42 = vpop.f32.mrb[7].mxu0  ;;  %v1822_v43 = vpop.f32.mrb[7].mxu1  ;;  %v1841_v6 = vmul.f32 %v1820_v28, %v1820_v28  ;;  %v1889_v5 = vld [vmem:[%s3148_s23] sm:$0xff] (%p2217_p5)  ;;  %v1891_v36 = vld [vmem:[%s3148_s23 + $0x8] sm:$0xff] (%p2217_p5) }
 0x23d   : > { %v1843_v63 = vadd.f32 %v1836_v44, %v1835_v11  ;;  %v1826_v0 = vadd.f32 %v1825_v45, %v1816_v52  ;;  %v1830_v30 = vadd.f32 %v1779_v42, %v1777_v50  ;;  %v1840_v18 = vmul.f32 %v1779_v42, %v1779_v42  ;;  %1890 = vst [vmem:[%s1876_s27] sm:$0xff] (%p2217_p5), %v1889_v5 }
 0x23e   : > { %1692 = vadd.xlane.f32.xlu0 %v1691_v29  ;;  %v1842_v19 = vmul.f32 %v1822_v43, %v1822_v43  ;;  %v1893_v51 = vld [vmem:[%s3148_s23 + $0x10] sm:$0xff] (%p2217_p5)  ;;  %1892 = vst [vmem:[%s1876_s27 + $0x8] sm:$0xff] (%p2217_p5), %v1891_v36 }
 0x23f   : > { %v1848_v46 = vadd.f32 %v1840_v18, %v1839_v49  ;;  %v1831_v26 = vadd.f32 %v1830_v30, %v1820_v28  ;;  %v1827_v25 = vadd.f32 %v1826_v0, %v1818_v13  ;;  %v1844_v54 = vadd.f32 %v1843_v63, %v1837_v16  ;;  %v1895_v39 = vld [vmem:[%s3148_s23 + $0x18] sm:$0xff] (%p2217_p5)  ;;  %1894 = vst [vmem:[%s1876_s27 + $0x20] sm:$0xff] (%p2217_p5), %v1893_v51 }
 0x240   : > { %1896 = vst [vmem:[%s1876_s27 + $0x28] sm:$0xff] (%p2217_p5), %v1895_v39 }
 0x241   : > { %v1832_v40 = vadd.f32 %v1831_v26, %v1822_v43  ;;  %1828 = vadd.xlane.f32.xlu1 %v1827_v25  ;;  %v1845_v24 = vadd.f32 %v1844_v54, %v1838_v48  ;;  %v1849_v4 = vadd.f32 %v1848_v46, %v1841_v6 }
 0x242   : > { %1697 = vadd.xlane.f32.xlu0 %v1696_v38 }
 0x243   : > { %v1850_v37 = vadd.f32 %v1849_v4, %v1842_v19 }
 0x245   : > { %1846 = vadd.xlane.f32.xlu1 %v1845_v24 }
 0x246   : > { %1833 = vadd.xlane.f32.xlu0 %v1832_v40 }
 0x24a   : > { %1851 = vadd.xlane.f32.xlu0 %v1850_v37 }
 0x2c7   : > { %v1675_v20 = vpop.xlane.xlu0 %1674 }
 0x2c8   : > { %1700 = vst.msk [vmem:[%s514_s13] sm:$0xff] %vm1699_vm1, %v1675_v20  ;;  %v1680_v23 = vpop.xlane.xlu1 %1679 }
 0x2c9   : > { %1701 = vst.msk [vmem:[%s514_s13 + $0x8] sm:$0xff] %vm1699_vm1, %v1680_v23 }
 0x2cb   : > { %v1693_v47 = vpop.xlane.xlu0 %1692 }
 0x2cc   : > { %1702 = vst.msk [vmem:[%s514_s13 + $0x10] sm:$0xff] %vm1699_vm1, %v1693_v47 }
 0x2ce   : > { %v1829_v21 = vpop.xlane.xlu1 %1828 }
 0x2cf   : > { %v1698_v10 = vpop.xlane.xlu0 %1697  ;;  %1853 = vst.msk [vmem:[%s519_s17] sm:$0xff] %vm1699_vm1, %v1829_v21 }
 0x2d0   : > { %1703 = vst.msk [vmem:[%s514_s13 + $0x18] sm:$0xff] %vm1699_vm1, %v1698_v10 }
 0x2d2   : > { %v1847_v14 = vpop.xlane.xlu1 %1846  ;;  %1873 = sbr.rel (!%p2217_p5) target bundleno = 729 (0x2d9), region = 94 }
 0x2d3   : > { %v1834_v3 = vpop.xlane.xlu0 %1833  ;;  %1855 = vst.msk [vmem:[%s519_s17 + $0x10] sm:$0xff] %vm1699_vm1, %v1847_v14 }
 0x2d4   : > { %1854 = vst.msk [vmem:[%s519_s17 + $0x8] sm:$0xff] %vm1699_vm1, %v1834_v3 }
 0x2d7   : > { %v1852_v1 = vpop.xlane.xlu0 %1851 }
 0x2d8   : > { %1856 = vst.msk [vmem:[%s519_s17 + $0x18] sm:$0xff] %vm1699_vm1, %v1852_v1 }
 0x2d9 PF: > { %p16_p11 = scmp.ge.s32.totalorder %s2201_s9, 4   ;;  %s3283_s27 = smov %s2130_s28 }
 0x2da   : > { %s3284_s28 = smov %s2211_s12  ;;  %s3285_s29 = smov %s2201_s9 }
 0x2db   :  { %18 = sbr.rel (!%p16_p11) target bundleno = 2 (0x2), region = 180 }

// kernel: basic_block_forward.5
= control target key start
LH: loop header
LB: loop body
LE: loop exit
PB: predicated region body
PF: predicated region fallthrough
CT: control target
= control target key end

     0   :  { %s829_s24 = smov 0   ;;  %s831_s25 = smov 0   ;;  %s937_s0 = inlined_call_operand.vmem [shape: bf16[16,1024], index: 0, kind: input, shape index: {}]   ;;  %s938_s1 = inlined_call_operand.vmem [shape: f32[16,1], index: 1, kind: input, shape index: {}]   ;;  %s939_s2 = inlined_call_operand.vmem [shape: f32[16,1], index: 2, kind: input, shape index: {}]   ;;  %s940_s3 = inlined_call_operand.vmem [shape: bf16[16,16], index: 3, kind: input, shape index: {}]   ;;  %s941_s4 = inlined_call_operand.vmem [shape: bf16[16,1024], index: 4, kind: input, shape index: {}]   ;;  %s942_s5 = inlined_call_operand.vmem [shape: f32[16,1], index: 5, kind: input, shape index: {}]   ;;  %s943_s6 = inlined_call_operand.vmem [shape: f32[16,1], index: 6, kind: input, shape index: {}]   ;;  %s944_s7 = inlined_call_operand.vmem [shape: f32[16,1024], index: 7, kind: output, shape index: {}]  }
   0x1   :  { %s833_s26 = smov 0  }
   0x2 LB: > { %s701_s27 = sadd.s32 4294967295, %s786_s26   ;;  %s846_s28 = sadd.s32 1, %s786_s26   ;;  %s786_s26 = sphi %s833_s26, %s949_s26   ;;  %s782_s25 = sphi %s831_s25, %s948_s25   ;;  %s778_s24 = sphi %s829_s24, %s947_s24  }
   0x3   : > { %s21_s29 = ssub.s32 %s786_s26, %s846_s28  ;;  %s24_s30 = sadd.s32 1, %s782_s25 }
   0x4   : > { %p22_p0 = scmp.eq.s32.totalorder %s21_s29, 0  ;;  %p31_p1 = scmp.ne.s32.totalorder %s782_s25, %s778_s24 }
   0x5   : > { %p32_p2 = scmp.eq.s32.totalorder %s786_s26, 0  ;;  %p192_p3 = scmp.eq.s32.totalorder %s701_s27, 1 }
   0x6   : > { %s857_s8 = scalar_select %p22_p0, %s782_s25, %s24_s30  }
   0x7   : > { %p859_p4 = por %p32_p2, %p31_p1  ;;  %p863_p5 = por %p192_p3, %p31_p1 }
   0x8   : > { %p704_p6 = scmp.ge.s32.totalorder %s786_s26, 2 }
   0xa   : > { %229 = sbr.rel (%p704_p6) target bundleno = 31 (0x1f), region = 36 }
  0x11   : > { %232 = sbr.rel (!%p859_p4) target bundleno = 24 (0x18), region = 40  ;;  %s234_s11 = sand.u32 (%p859_p4), 1, %s782_s25  }
  0x12   : > { %s727_s12 = sshll.u32 (%p859_p4), %s786_s26, 4  ;;  %s705_s13 = sshll.u32 (%p859_p4), %s234_s11, 5 }
  0x13   : > { %s239_s16 = scalar_lea.vmem (%p859_p4), %s937_s0, %s727_s12  ;;  %s236_s17 = scalar_lea.vmem (%p859_p4), [#allocation2], %s705_s13 }
  0x14   : > { %v252_v0 = vld [vmem:[%s239_s16] sm:$0xff] (%p859_p4)  ;;  %v254_v1 = vld [vmem:[%s239_s16 + $0x8] sm:$0xff] (%p859_p4) }
  0x15   : > { %v256_v2 = vld [vmem:[%s239_s16 + $0x20] sm:$0xff] (%p859_p4)  ;;  %253 = vst [vmem:[%s236_s17] sm:$0xff] (%p859_p4), %v252_v0  ;;  %255 = vst [vmem:[%s236_s17 + $0x8] sm:$0xff] (%p859_p4), %v254_v1  ;;  %v258_v3 = vld [vmem:[%s239_s16 + $0x28] sm:$0xff] (%p859_p4) }
  0x16   : > { %257 = vst [vmem:[%s236_s17 + $0x10] sm:$0xff] (%p859_p4), %v256_v2  ;;  %259 = vst [vmem:[%s236_s17 + $0x18] sm:$0xff] (%p859_p4), %v258_v3 }
  0x18 PF: > { %265 = sbr.rel (!%p859_p4) target bundleno = 31 (0x1f), region = 63  ;;  %s267_s18 = sand.u32 (%p859_p4), 1, %s782_s25  }
  0x19   : > { %s728_s19 = sshll.u32 (%p859_p4), %s786_s26, 4  ;;  %s708_s20 = sshll.u32 (%p859_p4), %s267_s18, 5 }
  0x1a   : > { %s272_s23 = scalar_lea.vmem (%p859_p4), %s941_s4, %s728_s19  ;;  %s269_s29 = scalar_lea.vmem (%p859_p4), [#allocation3], %s708_s20 }
  0x1b   : > { %v285_v4 = vld [vmem:[%s272_s23] sm:$0xff] (%p859_p4)  ;;  %v287_v5 = vld [vmem:[%s272_s23 + $0x8] sm:$0xff] (%p859_p4) }
  0x1c   : > { %v289_v6 = vld [vmem:[%s272_s23 + $0x20] sm:$0xff] (%p859_p4)  ;;  %286 = vst [vmem:[%s269_s29] sm:$0xff] (%p859_p4), %v285_v4  ;;  %288 = vst [vmem:[%s269_s29 + $0x8] sm:$0xff] (%p859_p4), %v287_v5  ;;  %v291_v7 = vld [vmem:[%s272_s23 + $0x28] sm:$0xff] (%p859_p4) }
  0x1d   : > { %290 = vst [vmem:[%s269_s29 + $0x10] sm:$0xff] (%p859_p4), %v289_v6  ;;  %292 = vst [vmem:[%s269_s29 + $0x18] sm:$0xff] (%p859_p4), %v291_v7 }
  0x1f PF: > { %p711_p7 = scmp.ge.s32.totalorder %s786_s26, 1  ;;  %p297_p8 = scmp.lt.s32.totalorder %s786_s26, 3 }
  0x21   : > { %p298_p9 = pnand %p711_p7, %p297_p8 }
  0x22   : > { %s304_s30 = sand.u32 (!%p298_p9), 1, %s778_s24   ;;  %v788_v8 = vmov (!%p298_p9), 0   ;;  %v522_v9 = vld [vmem:[%s942_s5] sm:$0xff] (!%p298_p9)  ;;  %v523_v12 = vld [vmem:[%s942_s5 + $0x8] sm:$0xff] (!%p298_p9)  ;;  %vm432_vm0 = vcmask (!%p298_p9), 130048  }
  0x23   : > { %301 = sbr.rel (%p298_p9) target bundleno = 274 (0x112), region = 86  ;;  %s887_s9 = sshll.u32 (!%p298_p9), %s304_s30, 5  ;;  %468 = vmatprep.mubr.bf16.mxu0 (!%p298_p9), %v788_v8  ;;  %511 = vmatprep.mubr.bf16.mxu1 (!%p298_p9), %v788_v8  ;;  %v361_v10 = vld [vmem:[%s938_s1] sm:$0xff] (!%p298_p9)  ;;  %v362_v16 = vld [vmem:[%s938_s1 + $0x8] sm:$0xff] (!%p298_p9) }
  0x24   : > { %756 = vset.pattern.permute.xlu1 (!%p298_p9), %v788_v8  ;;  %755 = vset.pattern.permute.xlu0 (!%p298_p9), %v788_v8  ;;  %s313_s15 = scalar_lea.vmem (!%p298_p9), [#allocation3], %s887_s9  ;;  %v763_v17 = vld [vmem:[%s940_s3] sm:$0xff] (!%p298_p9)   ;;  %v382_v18 = vld [vmem:[%s939_s2 + $0x8] sm:$0xff] (!%p298_p9)  ;;  %s306_s16 = scalar_lea.vmem (!%p298_p9), [#allocation2], %s887_s9 }
  0x25   : > { %v757_v11 = vld [vmem:[%s313_s15 + $0x4] ss:$16 sps:$4 sm:$0xff] (!%p298_p9)   ;;  %526 = vperm.xlu1 (!%p298_p9), %756, %v522_v9   ;;  %365 = vperm.xlu0 (!%p298_p9), %755, %v361_v10   ;;  %v759_v13 = vld [vmem:[%s313_s15 + $0xc] ss:$16 sps:$4 sm:$0xff] (!%p298_p9)   ;;  %v761_v14 = vld [vmem:[%s313_s15] ss:$16 sps:$4 sm:$0xff] (!%p298_p9)  }
  0x26   : > { %436 = vmatprep.subr.bf16.mxu0 (!%p298_p9), %v757_v11  ;;  %v762_v15 = vld [vmem:[%s313_s15 + $0x8] ss:$16 sps:$4 sm:$0xff] (!%p298_p9)   ;;  %479 = vmatprep.subr.bf16.mxu1 (!%p298_p9), %v759_v13  ;;  %v381_v19 = vld [vmem:[%s939_s2] sm:$0xff] (!%p298_p9)  ;;  %v351_v25 = vld [vmem:[%s306_s16 + $0x10] sm:$0xff] (!%p298_p9)  ;;  %s714_s9 = sshll.u32 (!%p298_p9), %s304_s30, 6 }
  0x27   : > { %437 = vmatpush1.bf16.msra.mxu0 (!%p298_p9), %v761_v14  ;;  %480 = vmatpush1.bf16.msra.mxu1 (!%p298_p9), %v762_v15  ;;  %v543_v20 = vld [vmem:[%s943_s6 + $0x8] sm:$0xff] (!%p298_p9)  ;;  %v542_v21 = vld [vmem:[%s943_s6] sm:$0xff] (!%p298_p9)  ;;  %v352_v26 = vld [vmem:[%s306_s16 + $0x18] sm:$0xff] (!%p298_p9)  ;;  %v357_v30 = vunpack.c.l.bf16 (!%p298_p9), %v351_v25  ;;  %v358_v31 = vunpack.c.h.bf16 (!%p298_p9), %v351_v25  ;;  %s344_s24 = scalar_lea.vmem (!%p298_p9), [#allocation4], %s714_s9 }
  0x28   : > { %v349_v27 = vld [vmem:[%s306_s16] sm:$0xff] (!%p298_p9)  ;;  %v350_v28 = vld [vmem:[%s306_s16 + $0x8] sm:$0xff] (!%p298_p9)  ;;  %v359_v32 = vunpack.c.l.bf16 (!%p298_p9), %v352_v26  ;;  %v360_v33 = vunpack.c.h.bf16 (!%p298_p9), %v352_v26 }
  0x29   : > { %531 = vperm.xlu1 (!%p298_p9), %756, %v523_v12   ;;  %370 = vperm.xlu0 (!%p298_p9), %755, %v362_v16   ;;  %v353_v34 = vunpack.c.l.bf16 (!%p298_p9), %v349_v27  ;;  %v354_v35 = vunpack.c.h.bf16 (!%p298_p9), %v349_v27  ;;  %v355_v37 = vunpack.c.l.bf16 (!%p298_p9), %v350_v28  ;;  %v356_v38 = vunpack.c.h.bf16 (!%p298_p9), %v350_v28 }
  0x2a   : > { %720 = vmatmul.mubr.msk.bf16.vlgmr.msra.gmra.mrb[0].mxu0 %vm432_vm0, %v763_v17  ;;  %721 = vmatmul.mubr.msk.bf16.vlgmr.msra.gmra.mrb[0].mxu1 %vm432_vm0, %v763_v17  ;;  %s729_s30 = sshll.u32 (%p863_p5), %s701_s27, 5 }
  0x2b   : > { %s595_s19 = scalar_lea.vmem (%p863_p5), %s944_s7, %s729_s30 }
  0x2d   : > { %390 = vperm.xlu1 %756, %v382_v18   ;;  %385 = vperm.xlu0 %755, %v381_v19  }
  0x31   : > { %551 = vperm.xlu1 %756, %v543_v20   ;;  %546 = vperm.xlu0 %755, %v542_v21  }
  0xa4   : > { %v366_v22 = vpop.permute.xlu0 %365  ;;  %v527_v23 = vpop.permute.xlu1 %526 }
  0xa5   : > { %v373_v43 = vmul.f32 %v366_v22, %v353_v34  ;;  %v374_v44 = vmul.f32 %v366_v22, %v354_v35  ;;  %v375_v45 = vmul.f32 %v366_v22, %v355_v37  ;;  %v376_v46 = vmul.f32 %v366_v22, %v356_v38 }
  0xa8   : > { %v371_v24 = vpop.permute.xlu0 %370  ;;  %v532_v29 = vpop.permute.xlu1 %531 }
  0xa9   : > { %v377_v39 = vmul.f32 %v371_v24, %v357_v30  ;;  %v378_v40 = vmul.f32 %v371_v24, %v358_v31  ;;  %v379_v41 = vmul.f32 %v371_v24, %v359_v32  ;;  %v380_v42 = vmul.f32 %v371_v24, %v360_v33 }
  0xac   : > { %v386_v36 = vpop.permute.xlu0 %385  ;;  %v391_v47 = vpop.permute.xlu1 %390 }
  0xad   : > { %v397_v49 = vadd.f32 %v391_v47, %v377_v39  ;;  %v398_v50 = vadd.f32 %v391_v47, %v378_v40  ;;  %v399_v51 = vadd.f32 %v391_v47, %v379_v41  ;;  %v400_v52 = vadd.f32 %v391_v47, %v380_v42 }
  0xae   : > { %v393_v55 = vadd.f32 %v386_v36, %v373_v43  ;;  %v394_v56 = vadd.f32 %v386_v36, %v374_v44  ;;  %v395_v61 = vadd.f32 %v386_v36, %v375_v45  ;;  %v396_v62 = vadd.f32 %v386_v36, %v376_v46 }
  0xb0   : > { %v547_v48 = vpop.permute.xlu0 %546  ;;  %v552_v9 = vpop.permute.xlu1 %551 }
  0xfd   : > { %v470_v53 = vpop.f32.mrb[0].mxu0  ;;  %v513_v54 = vpop.f32.mrb[0].mxu1 }
  0xfe   : > { %v534_v57 = vmul.f32 %v527_v23, %v470_v53  ;;  %v536_v58 = vmul.f32 %v527_v23, %v513_v54  ;;  %v472_v59 = vpop.f32.mrb[1].mxu0  ;;  %v515_v60 = vpop.f32.mrb[1].mxu1 }
  0xff   : > { %v535_v63 = vmul.f32 %v527_v23, %v472_v59  ;;  %v537_v0 = vmul.f32 %v527_v23, %v515_v60  ;;  %v474_v1 = vpop.f32.mrb[2].mxu0  ;;  %v517_v2 = vpop.f32.mrb[2].mxu1 }
 0x100   : > { %v554_v3 = vadd.f32 %v547_v48, %v534_v57  ;;  %v556_v4 = vadd.f32 %v547_v48, %v536_v58  ;;  %v538_v5 = vmul.f32 %v532_v29, %v474_v1  ;;  %v540_v6 = vmul.f32 %v532_v29, %v517_v2  ;;  %v476_v7 = vpop.f32.mrb[3].mxu0  ;;  %v519_v8 = vpop.f32.mrb[3].mxu1 }
 0x101   : > { %v555_v10 = vadd.f32 %v547_v48, %v535_v63  ;;  %v557_v11 = vadd.f32 %v547_v48, %v537_v0  ;;  %v539_v12 = vmul.f32 %v532_v29, %v476_v7  ;;  %v541_v13 = vmul.f32 %v532_v29, %v519_v8 }
 0x102   : > { %v562_v14 = vadd.f32 %v554_v3, %v393_v55  ;;  %v564_v15 = vadd.f32 %v556_v4, %v395_v61  ;;  %v558_v16 = vadd.f32 %v552_v9, %v538_v5  ;;  %v560_v17 = vadd.f32 %v552_v9, %v540_v6 }
 0x103   : > { %v563_v18 = vadd.f32 %v555_v10, %v394_v56  ;;  %v565_v19 = vadd.f32 %v557_v11, %v396_v62  ;;  %v559_v20 = vadd.f32 %v552_v9, %v539_v12  ;;  %v561_v21 = vadd.f32 %v552_v9, %v541_v13  ;;  %592 = sbr.rel (!%p863_p5) target bundleno = 274 (0x112), region = 98 }
 0x104   : > { %v570_v22 = vmax.f32 %v562_v14, 0.0  ;;  %v572_v23 = vmax.f32 %v564_v15, 0.0  ;;  %v566_v24 = vadd.f32 %v558_v16, %v397_v49  ;;  %v568_v25 = vadd.f32 %v560_v17, %v399_v51 }
 0x105   : > { %v571_v26 = vmax.f32 %v563_v18, 0.0  ;;  %v573_v27 = vmax.f32 %v565_v19, 0.0  ;;  %v567_v28 = vadd.f32 %v559_v20, %v398_v50  ;;  %v569_v30 = vadd.f32 %v561_v21, %v400_v52 }
 0x106   : > { %578 = vst [vmem:[%s344_s24] sm:$0xff] %v570_v22  ;;  %580 = vst [vmem:[%s344_s24 + $0x10] sm:$0xff] %v572_v23  ;;  %v574_v29 = vmax.f32 %v566_v24, 0.0  ;;  %v576_v31 = vmax.f32 %v568_v25, 0.0 }
 0x107   : > { %579 = vst [vmem:[%s344_s24 + $0x8] sm:$0xff] %v571_v26  ;;  %581 = vst [vmem:[%s344_s24 + $0x18] sm:$0xff] %v573_v27  ;;  %v575_v32 = vmax.f32 %v567_v28, 0.0  ;;  %v577_v33 = vmax.f32 %v569_v30, 0.0 }
 0x108   : > { %582 = vst [vmem:[%s344_s24 + $0x20] sm:$0xff] %v574_v29  ;;  %584 = vst [vmem:[%s344_s24 + $0x30] sm:$0xff] %v576_v31 }
 0x109   : > { %583 = vst [vmem:[%s344_s24 + $0x28] sm:$0xff] %v575_v32  ;;  %585 = vst [vmem:[%s344_s24 + $0x38] sm:$0xff] %v577_v33 }
 0x10d   : > { %v608_v34 = vld [vmem:[%s344_s24] sm:$0xff]  ;;  %v612_v36 = vld [vmem:[%s344_s24 + $0x10] sm:$0xff] }
 0x10e   : > { %v610_v35 = vld [vmem:[%s344_s24 + $0x8] sm:$0xff]  ;;  %v614_v37 = vld [vmem:[%s344_s24 + $0x18] sm:$0xff]  ;;  %609 = vst [vmem:[%s595_s19] sm:$0xff] %v608_v34  ;;  %613 = vst [vmem:[%s595_s19 + $0x10] sm:$0xff] %v612_v36 }
 0x10f   : > { %v616_v38 = vld [vmem:[%s344_s24 + $0x20] sm:$0xff]  ;;  %611 = vst [vmem:[%s595_s19 + $0x8] sm:$0xff] %v610_v35  ;;  %615 = vst [vmem:[%s595_s19 + $0x18] sm:$0xff] %v614_v37  ;;  %v620_v40 = vld [vmem:[%s344_s24 + $0x30] sm:$0xff] }
 0x110   : > { %v618_v39 = vld [vmem:[%s344_s24 + $0x28] sm:$0xff]  ;;  %617 = vst [vmem:[%s595_s19 + $0x40] sm:$0xff] %v616_v38  ;;  %v622_v41 = vld [vmem:[%s344_s24 + $0x38] sm:$0xff]  ;;  %621 = vst [vmem:[%s595_s19 + $0x50] sm:$0xff] %v620_v40 }
 0x111   : > { %619 = vst [vmem:[%s595_s19 + $0x48] sm:$0xff] %v618_v39  ;;  %623 = vst [vmem:[%s595_s19 + $0x58] sm:$0xff] %v622_v41 }
 0x112 PF: > { %p14_p10 = scmp.ge.s32.totalorder %s846_s28, 4   ;;  %s947_s24 = smov %s782_s25 }
 0x113   : > { %s948_s25 = smov %s857_s8  ;;  %s949_s26 = smov %s846_s28 }
 0x114   :  { %16 = sbr.rel (!%p14_p10) target bundleno = 2 (0x2), region = 160 }

</bundles_post_ra>
